<compile_context>
chip_gen: v7x
topology: tpu7x:2x2x1
jax: 0.10.0
libtpu: 0.0.40
codegen_flags: <defaults>
</compile_context>

<pallas_src>
import functools

import jax
import jax.numpy as jnp
from jax.experimental import pallas as pl
from jax.experimental.pallas import tpu as pltpu


# ------------------------------ small helpers -------------------------------

def _mxu_dot(a, b):
    """bf16 x bf16 matmul with f32 accumulation (native MXU path)."""
    return jnp.dot(a.astype(jnp.bfloat16), b.astype(jnp.bfloat16),
                   preferred_element_type=jnp.float32)


@functools.lru_cache(maxsize=None)
def _vmem_limit_bytes():
    cap = 128 * 1024 * 1024
    try:
        cap = int(getattr(pltpu.get_tpu_info(), "vmem_capacity_bytes", cap))
    except Exception:
        pass
    # ~48 MiB on v7x (64 MiB VMEM), ~96-100 MiB on v5e/v6e (128 MiB VMEM)
    return int(min(cap * 3 // 4, 100 * 1024 * 1024))


def _cparams(sem):
    return pltpu.CompilerParams(dimension_semantics=sem,
                                vmem_limit_bytes=_vmem_limit_bytes())


def _pick_tm(hw, candidates=(4096, 2048, 1024, 512, 256, 128)):
    for tm in candidates:
        if hw % tm == 0:
            return tm
    return hw


def _zero_border(ref, ph, pw):
    """Zero only the halo border strips of a (C, Hp, Wp) pad scratch."""
    cp, hp, wp = ref.shape
    zr = jnp.zeros((cp, ph, wp), ref.dtype)
    ref[:, :ph, :] = zr
    ref[:, hp - ph:, :] = zr
    zc = jnp.zeros((cp, hp, pw), ref.dtype)
    ref[:, :, :pw] = zc
    ref[:, :, wp - pw:] = zc


# ----------------------------- fused Pallas kernels -------------------------

def _block1_kernel(inp_ref, n1w_ref, n1b_ref, w1_ref, b1_ref, w2_ref, b2_ref,
                   o_ref, pad_ref, *, H, W, C, DW, eps):
    # LayerNorm over channels -> 1x1 conv (C -> DW) -> 3x3 depthwise conv
    HW = H * W
    x = inp_ref[0].astype(jnp.float32).reshape(C, HW)
    mu = jnp.mean(x, axis=0, keepdims=True)
    var = jnp.mean(jnp.square(x - mu), axis=0, keepdims=True)
    xn = (x - mu) * jax.lax.rsqrt(var + eps)
    xn = xn * n1w_ref[...] + n1b_ref[...]                 # (C,1) broadcast over HW
    h = _mxu_dot(w1_ref[...], xn) + b1_ref[...]           # (DW, HW)

    _zero_border(pad_ref, 1, 1)
    pad_ref[:, 1:1 + H, 1:1 + W] = h.reshape(DW, H, W)
    w2 = w2_ref[...].astype(jnp.float32)                  # (9, DW, 1, 1)
    acc = jnp.zeros((DW, H, W), jnp.float32)
    t = 0
    for dy in range(3):
        for dx in range(3):
            acc = acc + pad_ref[:, dy:dy + H, dx:dx + W] * w2[t]
            t += 1
    acc = acc + b2_ref[...]                               # (DW, 1, 1)
    o_ref[0] = acc.astype(o_ref.dtype)


def _lka_kernel(x_ref, wk5_ref, bk5_ref, wk7_ref, bk7_ref, wc_ref, bc_ref,
                sw_ref, sb_ref, s1_ref, s2_ref, pad5_ref, pad7_ref,
                *, H, W, DW, DWH):
    # LKA (5x5 dw -> 7x7 dilated dw -> 1x1) plus GAP+sca2 epilogue
    HW = H * W
    x = x_ref[0].astype(jnp.float32)                      # (DW, H, W)

    # GAP + sca2 (whole-image reduction folded into this kernel's epilogue)
    pooled = jnp.mean(jnp.mean(x, axis=-1), axis=-1, keepdims=True)   # (DW, 1)
    s2 = _mxu_dot(sw_ref[...], pooled) + sb_ref[...]                  # (DWH, 1)
    s2_ref[0] = s2.astype(s2_ref.dtype)

    # 5x5 depthwise
    _zero_border(pad5_ref, 2, 2)
    pad5_ref[:, 2:2 + H, 2:2 + W] = x
    w5 = wk5_ref[...].astype(jnp.float32)                 # (25, DW, 1, 1)
    acc = jnp.zeros((DW, H, W), jnp.float32)
    t = 0
    for dy in range(5):
        for dx in range(5):
            acc = acc + pad5_ref[:, dy:dy + H, dx:dx + W] * w5[t]
            t += 1
    acc = acc + bk5_ref[...]

    # 7x7 depthwise, dilation 3, padding 9
    _zero_border(pad7_ref, 9, 9)
    pad7_ref[:, 9:9 + H, 9:9 + W] = acc
    w7 = wk7_ref[...].astype(jnp.float32)                 # (49, DW, 1, 1)
    acc2 = jnp.zeros((DW, H, W), jnp.float32)
    t = 0
    for dy in range(7):
        for dx in range(7):
            acc2 = acc2 + pad7_ref[:, 3 * dy:3 * dy + H, 3 * dx:3 * dx + W] * w7[t]
            t += 1
    acc2 = acc2 + bk7_ref[...]

    # 1x1 conv DW -> DW/2
    s1 = _mxu_dot(wc_ref[...], acc2.reshape(DW, HW)) + bc_ref[...]    # (DWH, HW)
    s1_ref[0] = s1.reshape(DWH, H, W).astype(s1_ref.dtype)


def _gate_ffn_kernel(inp_ref, x1_ref, s1_ref, s2_ref, w3_ref, b3_ref, beta_ref,
                     n2w_ref, n2b_ref, w4_ref, b4_ref, y_ref, h_ref,
                     *, DWH, half, eps):
    # y = inp + conv3(sca2*sca1*SimpleGate(x1))*beta ; h = SG(conv4(LN2(y)))
    # Row-tiled over pixels: all blocks are (channels, TM) with TM on lanes.
    x = x1_ref[0].astype(jnp.float32)                     # (DW, TM)
    sg = x[:DWH] * x[DWH:]                                # SimpleGate (DWH, TM)
    g = s2_ref[0] * s1_ref[0].astype(jnp.float32) * sg
    z = _mxu_dot(w3_ref[...], g) + b3_ref[...]            # conv3 -> (C, TM)
    y = inp_ref[0].astype(jnp.float32) + z * beta_ref[...]
    y_ref[0] = y.astype(y_ref.dtype)

    mu = jnp.mean(y, axis=0, keepdims=True)
    var = jnp.mean(jnp.square(y - mu), axis=0, keepdims=True)
    yn = (y - mu) * jax.lax.rsqrt(var + eps)
    yn = yn * n2w_ref[...] + n2b_ref[...]
    hh = _mxu_dot(w4_ref[...], yn) + b4_ref[...]          # conv4 -> (FFN, TM)
    h_ref[0] = (hh[:half] * hh[half:]).astype(h_ref.dtype)


def _imac_kernel(*refs, H, W, CH, C, in_split, out_split, n_curve):
    # All IMAConv splits fused in one kernel, plus conv5 + gamma-residual epilogue.
    nsp = len(in_split)
    h_ref, y_ref = refs[0], refs[1]
    split_refs = refs[2:2 + 8 * nsp]
    w5_ref, b5_ref, gamma_ref = refs[2 + 8 * nsp:5 + 8 * nsp]
    o_ref = refs[5 + 8 * nsp]
    pad0_ref = refs[6 + 8 * nsp]
    pad1_ref = refs[7 + 8 * nsp]

    HW = H * W
    x = h_ref[0].astype(jnp.float32)                      # (CH, H, W)

    _zero_border(pad0_ref, 2, 2)
    _zero_border(pad1_ref, 1, 1)

    zacc = jnp.zeros((C, HW), jnp.float32) + b5_ref[...]  # conv5 bias + accumulator
    off = 0
    ooff = 0
    for i in range(nsp):
        isp, osp = in_split[i], out_split[i]
        rch = CH - isp
        (pa0w, pa0b, pa1w, pa1b, pa2w, pa2b, cw, cb) = split_refs[8 * i:8 * i + 8]

        # complement channels go straight into the pad scratch (no concat copy)
        if off > 0:
            pad0_ref[0:off, 2:2 + H, 2:2 + W] = x[:off]
        if off + isp < CH:
            pad0_ref[off:rch, 2:2 + H, 2:2 + W] = x[off + isp:]

        # predictA: 5x5 conv (rest -> isp) + ReLU, per-tap MXU accumulation
        a = jnp.zeros((isp, HW), jnp.float32) + pa0b[...]
        t = 0
        for dy in range(5):
            for dx in range(5):
                sl = pad0_ref[0:rch, dy:dy + H, dx:dx + W].reshape(rch, HW)
                a = a + _mxu_dot(pa0w[t], sl)
                t += 1
        a = jnp.maximum(a, 0.0)

        # predictA: 3x3 conv (isp -> isp) + ReLU
        pad1_ref[0:isp, 1:1 + H, 1:1 + W] = a.reshape(isp, H, W)
        a2 = jnp.zeros((isp, HW), jnp.float32) + pa1b[...]
        t = 0
        for dy in range(3):
            for dx in range(3):
                sl = pad1_ref[0:isp, dy:dy + H, dx:dx + W].reshape(isp, HW)
                a2 = a2 + _mxu_dot(pa1w[t], sl)
                t += 1
        a2 = jnp.maximum(a2, 0.0)

        # predictA: 1x1 conv (isp -> n_curve) + sigmoid, on VPU/XLU (no MXU)
        coeffs = []
        for j in range(n_curve):
            cj = jnp.sum(a2 * pa2w[j], axis=0, keepdims=True) + pa2b[j]
            coeffs.append(jax.nn.sigmoid(cj))

        # curve enhancement of this split's own channels
        tc = x[off:off + isp].reshape(isp, HW)
        tc = jnp.maximum(tc, 0.0) - jnp.maximum(tc - 1.0, 0.0)   # clamp to [0,1]
        for j in range(n_curve):
            tc = tc + coeffs[j] * tc * (1.0 - tc)

        # final 3x3 conv (isp -> osp), per-tap MXU accumulation
        pad1_ref[0:isp, 1:1 + H, 1:1 + W] = tc.reshape(isp, H, W)
        o = jnp.zeros((osp, HW), jnp.float32) + cb[...]
        t = 0
        for dy in range(3):
            for dx in range(3):
                sl = pad1_ref[0:isp, dy:dy + H, dx:dx + W].reshape(isp, HW)
                o = o + _mxu_dot(cw[t], sl)
                t += 1

        # conv5 epilogue contribution from this split's output channels
        zacc = zacc + _mxu_dot(w5_ref[:, ooff:ooff + osp], o)
        off += isp
        ooff += osp

    out = y_ref[0].astype(jnp.float32) + zacc * gamma_ref[...]
    o_ref[0] = out.astype(o_ref.dtype)


# ------------------------------- wrappers ------------------------------------

def block1(inp, p):
    N, C, H, W = inp.shape
    DW = p['conv1_w'].shape[0]
    kern = functools.partial(_block1_kernel, H=H, W=W, C=C, DW=DW, eps=1e-6)
    return pl.pallas_call(
        kern,
        out_shape=jax.ShapeDtypeStruct((N, DW, H, W), inp.dtype),
        grid=(N,),
        in_specs=[
            pl.BlockSpec((1, C, H, W), lambda n: (n, 0, 0, 0)),
            pl.BlockSpec((C, 1), lambda n: (0, 0)),
            pl.BlockSpec((C, 1), lambda n: (0, 0)),
            pl.BlockSpec((DW, C), lambda n: (0, 0)),
            pl.BlockSpec((DW, 1), lambda n: (0, 0)),
            pl.BlockSpec((9, DW, 1, 1), lambda n: (0, 0, 0, 0)),
            pl.BlockSpec((DW, 1, 1), lambda n: (0, 0, 0)),
        ],
        out_specs=pl.BlockSpec((1, DW, H, W), lambda n: (n, 0, 0, 0)),
        scratch_shapes=[pltpu.VMEM((DW, H + 2, W + 2), jnp.float32)],
        compiler_params=_cparams(("parallel",)),
    )(inp, p['norm1_w'], p['norm1_b'], p['conv1_w'], p['conv1_b'],
      p['conv2_w'], p['conv2_b'])


def lka(x1, p):
    N, DW, H, W = x1.shape
    DWH = DW // 2
    kern = functools.partial(_lka_kernel, H=H, W=W, DW=DW, DWH=DWH)
    return pl.pallas_call(
        kern,
        out_shape=(jax.ShapeDtypeStruct((N, DWH, H, W), x1.dtype),
                   jax.ShapeDtypeStruct((N, DWH, 1), jnp.float32)),
        grid=(N,),
        in_specs=[
            pl.BlockSpec((1, DW, H, W), lambda n: (n, 0, 0, 0)),
            pl.BlockSpec((25, DW, 1, 1), lambda n: (0, 0, 0, 0)),
            pl.BlockSpec((DW, 1, 1), lambda n: (0, 0, 0)),
            pl.BlockSpec((49, DW, 1, 1), lambda n: (0, 0, 0, 0)),
            pl.BlockSpec((DW, 1, 1), lambda n: (0, 0, 0)),
            pl.BlockSpec((DWH, DW), lambda n: (0, 0)),
            pl.BlockSpec((DWH, 1), lambda n: (0, 0)),
            pl.BlockSpec((DWH, DW), lambda n: (0, 0)),
            pl.BlockSpec((DWH, 1), lambda n: (0, 0)),
        ],
        out_specs=(pl.BlockSpec((1, DWH, H, W), lambda n: (n, 0, 0, 0)),
                   pl.BlockSpec((1, DWH, 1), lambda n: (n, 0, 0))),
        scratch_shapes=[pltpu.VMEM((DW, H + 4, W + 4), jnp.float32),
                        pltpu.VMEM((DW, H + 18, W + 18), jnp.float32)],
        compiler_params=_cparams(("parallel",)),
    )(x1, p['lka_c0_w'], p['lka_c0_b'], p['lka_cs_w'], p['lka_cs_b'],
      p['lka_c1_w'], p['lka_c1_b'], p['sca2_w'], p['sca2_b'])


def gate_ffn(inp, x1, s1, s2, p):
    N, C, H, W = inp.shape
    DW = x1.shape[1]
    DWH = DW // 2
    FFN = p['conv4_w'].shape[0]
    half = FFN // 2
    HW = H * W
    TM = _pick_tm(HW)
    inp_r = inp.reshape(N, C, HW)
    x1_r = x1.reshape(N, DW, HW)
    s1_r = s1.reshape(N, DWH, HW)
    kern = functools.partial(_gate_ffn_kernel, DWH=DWH, half=half, eps=1e-6)
    y, h = pl.pallas_call(
        kern,
        out_shape=(jax.ShapeDtypeStruct((N, C, HW), inp.dtype),
                   jax.ShapeDtypeStruct((N, half, HW), inp.dtype)),
        grid=(N, HW // TM),
        in_specs=[
            pl.BlockSpec((1, C, TM), lambda n, i: (n, 0, i)),
            pl.BlockSpec((1, DW, TM), lambda n, i: (n, 0, i)),
            pl.BlockSpec((1, DWH, TM), lambda n, i: (n, 0, i)),
            pl.BlockSpec((1, DWH, 1), lambda n, i: (n, 0, 0)),
            pl.BlockSpec((C, DWH), lambda n, i: (0, 0)),
            pl.BlockSpec((C, 1), lambda n, i: (0, 0)),
            pl.BlockSpec((C, 1), lambda n, i: (0, 0)),
            pl.BlockSpec((C, 1), lambda n, i: (0, 0)),
            pl.BlockSpec((C, 1), lambda n, i: (0, 0)),
            pl.BlockSpec((FFN, C), lambda n, i: (0, 0)),
            pl.BlockSpec((FFN, 1), lambda n, i: (0, 0)),
        ],
        out_specs=(pl.BlockSpec((1, C, TM), lambda n, i: (n, 0, i)),
                   pl.BlockSpec((1, half, TM), lambda n, i: (n, 0, i))),
        compiler_params=_cparams(("parallel", "parallel")),
    )(inp_r, x1_r, s1_r, s2, p['conv3_w'], p['conv3_b'], p['beta'],
      p['norm2_w'], p['norm2_b'], p['conv4_w'], p['conv4_b'])
    return y, h


def imac_conv5(h, y, p, cfg):
    # h: (N, CH, H, W) SimpleGate output;  y: (N, C, H*W) residual input
    N, CH, H, W = h.shape
    C = y.shape[1]
    HW = H * W
    split = cfg['split']
    n_curve = cfg['n_curve']
    in_split = tuple(cfg['in_split'])
    out_split = tuple(cfg['out_split'])
    rch_max = max(CH - isp for isp in in_split)
    isp_max = max(in_split)

    kern = functools.partial(_imac_kernel, H=H, W=W, CH=CH, C=C,
                             in_split=in_split, out_split=out_split,
                             n_curve=n_curve)
    in_specs = [
        pl.BlockSpec((1, CH, H, W), lambda n: (n, 0, 0, 0)),
        pl.BlockSpec((1, C, HW), lambda n: (n, 0, 0)),
    ]
    args = [h, y]
    for i in range(split):
        isp, osp = in_split[i], out_split[i]
        rch = CH - isp
        blk = p['imac'][i]
        in_specs += [
            pl.BlockSpec((25, isp, rch), lambda n: (0, 0, 0)),
            pl.BlockSpec((isp, 1), lambda n: (0, 0)),
            pl.BlockSpec((9, isp, isp), lambda n: (0, 0, 0)),
            pl.BlockSpec((isp, 1), lambda n: (0, 0)),
            pl.BlockSpec((n_curve, isp, 1), lambda n: (0, 0, 0)),
            pl.BlockSpec((n_curve, 1, 1), lambda n: (0, 0, 0)),
            pl.BlockSpec((9, osp, isp), lambda n: (0, 0, 0)),
            pl.BlockSpec((osp, 1), lambda n: (0, 0)),
        ]
        args += [blk['pa0_w'], blk['pa0_b'], blk['pa1_w'], blk['pa1_b'],
                 blk['pa2_w'], blk['pa2_b'], blk['conv_w'], blk['conv_b']]
    in_specs += [
        pl.BlockSpec((C, CH), lambda n: (0, 0)),
        pl.BlockSpec((C, 1), lambda n: (0, 0)),
        pl.BlockSpec((C, 1), lambda n: (0, 0)),
    ]
    args += [p['conv5_w'], p['conv5_b'], p['gamma']]

    return pl.pallas_call(
        kern,
        out_shape=jax.ShapeDtypeStruct((N, C, HW), y.dtype),
        grid=(N,),
        in_specs=in_specs,
        out_specs=pl.BlockSpec((1, C, HW), lambda n: (n, 0, 0)),
        scratch_shapes=[pltpu.VMEM((rch_max, H + 4, W + 4), jnp.float32),
                        pltpu.VMEM((isp_max, H + 2, W + 2), jnp.float32)],
        compiler_params=_cparams(("parallel",)),
    )(*args)


# --------------------------- parameters & model ------------------------------

def imaconv_splits(in_channel, out_channel, split):
    # replicates the split-size logic from IMAConv.__init__
    assert in_channel == out_channel, "IMAConv split math requires in == out channels"
    fracs = [1.0 / split] * split
    in_split, in_split_rest, out_split = [], [], []
    for i in range(split):
        isp = round(in_channel * fracs[i]) if i < split - 1 else in_channel - sum(in_split)
        in_split.append(isp)
        in_split_rest.append(in_channel - isp)
        osp = round(out_channel * fracs[i]) if i < split - 1 else in_channel - sum(out_split)
        out_split.append(osp)
    return in_split, in_split_rest, out_split


def init_params(key, c, dw_expand=2, ffn_expand=2, split=4, n_curve=3):
    # TODO(synk): add a loader that permutes real PyTorch (Cout,Cin,Kh,Kw)
    # checkpoints into the per-tap / channel-first layouts used below.
    dw = c * dw_expand
    dwh = dw // 2
    ffn = ffn_expand * c
    half = ffn // 2
    keys = iter(jax.random.split(key, 256))
    bf = jnp.bfloat16

    def rnd(shape, scale=0.1, dtype=jnp.float32):
        return (jax.random.normal(next(keys), shape, jnp.float32) * scale).astype(dtype)

    p = {}
    p['norm1_w'] = jnp.ones((c, 1), jnp.float32) + rnd((c, 1), 0.05)
    p['norm1_b'] = rnd((c, 1), 0.05)
    p['norm2_w'] = jnp.ones((c, 1), jnp.float32) + rnd((c, 1), 0.05)
    p['norm2_b'] = rnd((c, 1), 0.05)
    # 1x1 conv weights stored (Cout, Cin) bf16 (MXU native), biases f32 (Cout, 1)
    p['conv1_w'] = rnd((dw, c), dtype=bf);    p['conv1_b'] = rnd((dw, 1), 0.01)
    # depthwise weights stored (K*K, C, 1, 1) f32, biases (C, 1, 1)
    p['conv2_w'] = rnd((9, dw, 1, 1));        p['conv2_b'] = rnd((dw, 1, 1), 0.01)
    p['conv3_w'] = rnd((c, dwh), dtype=bf);   p['conv3_b'] = rnd((c, 1), 0.01)
    p['lka_c0_w'] = rnd((25, dw, 1, 1));      p['lka_c0_b'] = rnd((dw, 1, 1), 0.01)
    p['lka_cs_w'] = rnd((49, dw, 1, 1));      p['lka_cs_b'] = rnd((dw, 1, 1), 0.01)
    p['lka_c1_w'] = rnd((dwh, dw), dtype=bf); p['lka_c1_b'] = rnd((dwh, 1), 0.01)
    p['sca2_w'] = rnd((dwh, dw), dtype=bf);   p['sca2_b'] = rnd((dwh, 1), 0.01)
    p['conv4_w'] = rnd((ffn, c), dtype=bf);   p['conv4_b'] = rnd((ffn, 1), 0.01)
    p['conv5_w'] = rnd((c, half), dtype=bf);  p['conv5_b'] = rnd((c, 1), 0.01)
    # NOTE: PyTorch initializes beta/gamma to zero (identity residual); small
    # non-zero values are used here only so the branches are exercised numerically.
    p['beta'] = rnd((c, 1), 0.1)
    p['gamma'] = rnd((c, 1), 0.1)

    in_split, in_split_rest, out_split = imaconv_splits(half, half, split)
    p['imac'] = []
    for i in range(split):
        isp, rest, osp = in_split[i], in_split_rest[i], out_split[i]
        p['imac'].append(dict(
            # dense conv weights stored per-tap: (K*K, Cout, Cin), bf16
            pa0_w=rnd((25, isp, rest), dtype=bf),  pa0_b=rnd((isp, 1), 0.01),
            pa1_w=rnd((9, isp, isp), dtype=bf),    pa1_b=rnd((isp, 1), 0.01),
            pa2_w=rnd((n_curve, isp, 1)),          pa2_b=rnd((n_curve, 1, 1), 0.01),
            conv_w=rnd((9, osp, isp), dtype=bf),   conv_b=rnd((osp, 1), 0.01),
        ))
    p['_cfg'] = dict(c=c, dw=dw, ffn=ffn, split=split, n_curve=n_curve,
                     in_split=in_split, out_split=out_split)
    return p


def aiem_forward(inp, p):
    """AIEM forward.  inp: (N, C, H, W) float32 (NCHW, same as the PyTorch module)."""
    cfg = p['_cfg']
    N, C, H, W = inp.shape
    x1 = block1(inp, p)                                   # LN1 + conv1 + dw3x3 -> (N,DW,H,W)
    s1, s2 = lka(x1, p)                                   # sca1 (N,DWH,H,W), sca2 (N,DWH,1)
    y, h = gate_ffn(inp, x1, s1, s2, p)                   # y (N,C,HW), h=SG(conv4(LN2(y)))
    out = imac_conv5(h.reshape(N, -1, H, W), y, p, cfg)   # IMAConv + conv5 + gamma residual
    return out.reshape(N, C, H, W)


if __name__ == "__main__":
    key = jax.random.PRNGKey(0)
    k_inp, k_par = jax.random.split(key)
    N, C, H, W = 2, 4, 16, 16
    x = jax.random.normal(k_inp, (N, C, H, W), jnp.float32)
    params = init_params(k_par, c=C, dw_expand=2, ffn_expand=2, split=4, n_curve=3)
    out = aiem_forward(x, params)
    out = jax.block_until_ready(out)
    assert out.shape == (N, C, H, W)
    assert bool(jnp.all(jnp.isfinite(out)))
    print("KERNEL_OK")
</pallas_src>

<mosaic_0001>
module attributes {stable_mosaic.version = 11 : i64} {
  func.func @_block1_kernel(%arg0: i32, %arg1: memref<1x4x16x16xf32, #tpu.memory_space<vmem>>, %arg2: memref<4x1xf32, #tpu.memory_space<vmem>>, %arg3: memref<4x1xf32, #tpu.memory_space<vmem>>, %arg4: memref<8x4xbf16, #tpu.memory_space<vmem>>, %arg5: memref<8x1xf32, #tpu.memory_space<vmem>>, %arg6: memref<9x8x1x1xf32, #tpu.memory_space<vmem>>, %arg7: memref<8x1x1xf32, #tpu.memory_space<vmem>>, %arg8: memref<1x8x16x16xf32, #tpu.memory_space<vmem>>, %arg9: memref<8x18x18xf32, #tpu.memory_space<vmem>>) attributes {dimension_semantics = [#tpu.dimension_semantics<parallel>], iteration_bounds = array<i64: 2>, scalar_prefetch = 0 : i64, scratch_operands = 1 : i64, tpu.core_type = #tpu.core_type<tc>, window_params = [{transform_indices = @transform_0, window_bounds = array<i64: 1, 4, 16, 16>}, {pipeline_mode = #tpu.pipeline_mode<synchronous>, transform_indices = @transform_1, window_bounds = array<i64: 4, 1>}, {pipeline_mode = #tpu.pipeline_mode<synchronous>, transform_indices = @transform_2, window_bounds = array<i64: 4, 1>}, {pipeline_mode = #tpu.pipeline_mode<synchronous>, transform_indices = @transform_3, window_bounds = array<i64: 8, 4>}, {pipeline_mode = #tpu.pipeline_mode<synchronous>, transform_indices = @transform_4, window_bounds = array<i64: 8, 1>}, {pipeline_mode = #tpu.pipeline_mode<synchronous>, transform_indices = @transform_5, window_bounds = array<i64: 9, 8, 1, 1>}, {pipeline_mode = #tpu.pipeline_mode<synchronous>, transform_indices = @transform_6, window_bounds = array<i64: 8, 1, 1>}, {transform_indices = @transform_7, window_bounds = array<i64: 1, 8, 16, 16>}]} {
    %c0 = arith.constant 0 : index
    %c0_0 = arith.constant 0 : index
    %c0_1 = arith.constant 0 : index
    %c0_2 = arith.constant 0 : index
    %0 = vector.load %arg1[%c0, %c0_0, %c0_1, %c0_2] : memref<1x4x16x16xf32, #tpu.memory_space<vmem>>, vector<1x4x16x16xf32>
    %1 = vector.shape_cast %0 : vector<1x4x16x16xf32> to vector<4x16x16xf32>
    %2 = vector.shape_cast %1 : vector<4x16x16xf32> to vector<4x256xf32>
    %cst = arith.constant dense<0.000000e+00> : vector<256xf32>
    %3 = vector.multi_reduction <add>, %2, %cst [0] : vector<4x256xf32> to vector<256xf32>
    %4 = vector.shape_cast %3 : vector<256xf32> to vector<1x256xf32>
    %cst_3 = arith.constant 4.000000e+00 : f32
    %5 = vector.broadcast %cst_3 : f32 to vector<1x256xf32>
    %6 = arith.divf %4, %5 : vector<1x256xf32>
    %7 = vector.broadcast %6 : vector<1x256xf32> to vector<4x256xf32>
    %8 = arith.subf %2, %7 : vector<4x256xf32>
    %9 = arith.mulf %8, %8 : vector<4x256xf32>
    %cst_4 = arith.constant dense<0.000000e+00> : vector<256xf32>
    %10 = vector.multi_reduction <add>, %9, %cst_4 [0] : vector<4x256xf32> to vector<256xf32>
    %11 = vector.shape_cast %10 : vector<256xf32> to vector<1x256xf32>
    %cst_5 = arith.constant 4.000000e+00 : f32
    %12 = vector.broadcast %cst_5 : f32 to vector<1x256xf32>
    %13 = arith.divf %11, %12 : vector<1x256xf32>
    %14 = vector.broadcast %6 : vector<1x256xf32> to vector<4x256xf32>
    %15 = arith.subf %2, %14 : vector<4x256xf32>
    %cst_6 = arith.constant 9.99999997E-7 : f32
    %16 = vector.broadcast %cst_6 : f32 to vector<1x256xf32>
    %17 = arith.addf %13, %16 : vector<1x256xf32>
    %18 = math.rsqrt %17 : vector<1x256xf32>
    %19 = vector.broadcast %18 : vector<1x256xf32> to vector<4x256xf32>
    %20 = arith.mulf %15, %19 : vector<4x256xf32>
    %c0_7 = arith.constant 0 : index
    %c0_8 = arith.constant 0 : index
    %21 = vector.load %arg2[%c0_7, %c0_8] : memref<4x1xf32, #tpu.memory_space<vmem>>, vector<4x1xf32>
    %22 = vector.broadcast %21 : vector<4x1xf32> to vector<4x256xf32>
    %23 = arith.mulf %20, %22 : vector<4x256xf32>
    %c0_9 = arith.constant 0 : index
    %c0_10 = arith.constant 0 : index
    %24 = vector.load %arg3[%c0_9, %c0_10] : memref<4x1xf32, #tpu.memory_space<vmem>>, vector<4x1xf32>
    %25 = vector.broadcast %24 : vector<4x1xf32> to vector<4x256xf32>
    %26 = arith.addf %23, %25 : vector<4x256xf32>
    %c0_11 = arith.constant 0 : index
    %c0_12 = arith.constant 0 : index
    %27 = vector.load %arg4[%c0_11, %c0_12] : memref<8x4xbf16, #tpu.memory_space<vmem>>, vector<8x4xbf16>
    %28 = arith.truncf %26 : vector<4x256xf32> to vector<4x256xbf16>
    %cst_13 = arith.constant dense<0.000000e+00> : vector<8x256xf32>
    %29 = tpu.matmul %27, %28, %cst_13 {dimension_numbers = #tpu.dot_dimension_numbers<[1], [0], [0], [1], [0, 0, 1, 1], [], []>} : vector<8x4xbf16>, vector<4x256xbf16>, vector<8x256xf32> -> vector<8x256xf32>
    %c0_14 = arith.constant 0 : index
    %c0_15 = arith.constant 0 : index
    %30 = vector.load %arg5[%c0_14, %c0_15] : memref<8x1xf32, #tpu.memory_space<vmem>>, vector<8x1xf32>
    %31 = vector.broadcast %30 : vector<8x1xf32> to vector<8x256xf32>
    %32 = arith.addf %29, %31 : vector<8x256xf32>
    %cst_16 = arith.constant 0.000000e+00 : f32
    %33 = vector.broadcast %cst_16 : f32 to vector<8x1x18xf32>
    %c0_17 = arith.constant 0 : index
    %c0_18 = arith.constant 0 : index
    %c0_19 = arith.constant 0 : index
    %34 = vector.load %arg9[%c0_17, %c0_18, %c0_19] : memref<8x18x18xf32, #tpu.memory_space<vmem>>, vector<8x1x18xf32>
    tpu.vector_store %arg9[%c0_17, %c0_18, %c0_19], %33 {strides = array<i32>} : memref<8x18x18xf32, #tpu.memory_space<vmem>>, vector<8x1x18xf32>,
    %c0_20 = arith.constant 0 : index
    %c17 = arith.constant 17 : index
    %c0_21 = arith.constant 0 : index
    %35 = vector.load %arg9[%c0_20, %c17, %c0_21] : memref<8x18x18xf32, #tpu.memory_space<vmem>>, vector<8x1x18xf32>
    tpu.vector_store %arg9[%c0_20, %c17, %c0_21], %33 {strides = array<i32>} : memref<8x18x18xf32, #tpu.memory_space<vmem>>, vector<8x1x18xf32>,
    %cst_22 = arith.constant 0.000000e+00 : f32
    %36 = vector.broadcast %cst_22 : f32 to vector<8x18x1xf32>
    %c0_23 = arith.constant 0 : index
    %c0_24 = arith.constant 0 : index
    %c0_25 = arith.constant 0 : index
    %37 = vector.load %arg9[%c0_23, %c0_24, %c0_25] : memref<8x18x18xf32, #tpu.memory_space<vmem>>, vector<8x18x1xf32>
    tpu.vector_store %arg9[%c0_23, %c0_24, %c0_25], %36 {strides = array<i32>} : memref<8x18x18xf32, #tpu.memory_space<vmem>>, vector<8x18x1xf32>,
    %c0_26 = arith.constant 0 : index
    %c0_27 = arith.constant 0 : index
    %c17_28 = arith.constant 17 : index
    %38 = vector.load %arg9[%c0_26, %c0_27, %c17_28] : memref<8x18x18xf32, #tpu.memory_space<vmem>>, vector<8x18x1xf32>
    tpu.vector_store %arg9[%c0_26, %c0_27, %c17_28], %36 {strides = array<i32>} : memref<8x18x18xf32, #tpu.memory_space<vmem>>, vector<8x18x1xf32>,
    %39 = vector.shape_cast %32 : vector<8x256xf32> to vector<8x16x16xf32>
    %c0_29 = arith.constant 0 : index
    %c1 = arith.constant 1 : index
    %c1_30 = arith.constant 1 : index
    %40 = vector.load %arg9[%c0_29, %c1, %c1_30] : memref<8x18x18xf32, #tpu.memory_space<vmem>>, vector<8x16x16xf32>
    tpu.vector_store %arg9[%c0_29, %c1, %c1_30], %39 {strides = array<i32>} : memref<8x18x18xf32, #tpu.memory_space<vmem>>, vector<8x16x16xf32>,
    %c0_31 = arith.constant 0 : index
    %c0_32 = arith.constant 0 : index
    %c0_33 = arith.constant 0 : index
    %c0_34 = arith.constant 0 : index
    %41 = vector.load %arg6[%c0_31, %c0_32, %c0_33, %c0_34] : memref<9x8x1x1xf32, #tpu.memory_space<vmem>>, vector<9x8x1x1xf32>
    %cst_35 = arith.constant 0.000000e+00 : f32
    %42 = vector.broadcast %cst_35 : f32 to vector<8x16x16xf32>
    %c0_36 = arith.constant 0 : index
    %c0_37 = arith.constant 0 : index
    %c0_38 = arith.constant 0 : index
    %43 = vector.load %arg9[%c0_36, %c0_37, %c0_38] : memref<8x18x18xf32, #tpu.memory_space<vmem>>, vector<8x16x16xf32>
    %44 = vector.extract_strided_slice %41 {offsets = [0, 0, 0, 0], sizes = [1, 8, 1, 1], strides = [1, 1, 1, 1]} : vector<9x8x1x1xf32> to vector<1x8x1x1xf32>
    %45 = vector.shape_cast %44 : vector<1x8x1x1xf32> to vector<8x1x1xf32>
    %46 = vector.broadcast %45 : vector<8x1x1xf32> to vector<8x16x16xf32>
    %47 = arith.mulf %43, %46 : vector<8x16x16xf32>
    %48 = arith.addf %42, %47 : vector<8x16x16xf32>
    %c0_39 = arith.constant 0 : index
    %c0_40 = arith.constant 0 : index
    %c1_41 = arith.constant 1 : index
    %49 = vector.load %arg9[%c0_39, %c0_40, %c1_41] : memref<8x18x18xf32, #tpu.memory_space<vmem>>, vector<8x16x16xf32>
    %50 = vector.extract_strided_slice %41 {offsets = [1, 0, 0, 0], sizes = [1, 8, 1, 1], strides = [1, 1, 1, 1]} : vector<9x8x1x1xf32> to vector<1x8x1x1xf32>
    %51 = vector.shape_cast %50 : vector<1x8x1x1xf32> to vector<8x1x1xf32>
    %52 = vector.broadcast %51 : vector<8x1x1xf32> to vector<8x16x16xf32>
    %53 = arith.mulf %49, %52 : vector<8x16x16xf32>
    %54 = arith.addf %48, %53 : vector<8x16x16xf32>
    %c0_42 = arith.constant 0 : index
    %c0_43 = arith.constant 0 : index
    %c2 = arith.constant 2 : index
    %55 = vector.load %arg9[%c0_42, %c0_43, %c2] : memref<8x18x18xf32, #tpu.memory_space<vmem>>, vector<8x16x16xf32>
    %56 = vector.extract_strided_slice %41 {offsets = [2, 0, 0, 0], sizes = [1, 8, 1, 1], strides = [1, 1, 1, 1]} : vector<9x8x1x1xf32> to vector<1x8x1x1xf32>
    %57 = vector.shape_cast %56 : vector<1x8x1x1xf32> to vector<8x1x1xf32>
    %58 = vector.broadcast %57 : vector<8x1x1xf32> to vector<8x16x16xf32>
    %59 = arith.mulf %55, %58 : vector<8x16x16xf32>
    %60 = arith.addf %54, %59 : vector<8x16x16xf32>
    %c0_44 = arith.constant 0 : index
    %c1_45 = arith.constant 1 : index
    %c0_46 = arith.constant 0 : index
    %61 = vector.load %arg9[%c0_44, %c1_45, %c0_46] : memref<8x18x18xf32, #tpu.memory_space<vmem>>, vector<8x16x16xf32>
    %62 = vector.extract_strided_slice %41 {offsets = [3, 0, 0, 0], sizes = [1, 8, 1, 1], strides = [1, 1, 1, 1]} : vector<9x8x1x1xf32> to vector<1x8x1x1xf32>
    %63 = vector.shape_cast %62 : vector<1x8x1x1xf32> to vector<8x1x1xf32>
    %64 = vector.broadcast %63 : vector<8x1x1xf32> to vector<8x16x16xf32>
    %65 = arith.mulf %61, %64 : vector<8x16x16xf32>
    %66 = arith.addf %60, %65 : vector<8x16x16xf32>
    %c0_47 = arith.constant 0 : index
    %c1_48 = arith.constant 1 : index
    %c1_49 = arith.constant 1 : index
    %67 = vector.load %arg9[%c0_47, %c1_48, %c1_49] : memref<8x18x18xf32, #tpu.memory_space<vmem>>, vector<8x16x16xf32>
    %68 = vector.extract_strided_slice %41 {offsets = [4, 0, 0, 0], sizes = [1, 8, 1, 1], strides = [1, 1, 1, 1]} : vector<9x8x1x1xf32> to vector<1x8x1x1xf32>
    %69 = vector.shape_cast %68 : vector<1x8x1x1xf32> to vector<8x1x1xf32>
    %70 = vector.broadcast %69 : vector<8x1x1xf32> to vector<8x16x16xf32>
    %71 = arith.mulf %67, %70 : vector<8x16x16xf32>
    %72 = arith.addf %66, %71 : vector<8x16x16xf32>
    %c0_50 = arith.constant 0 : index
    %c1_51 = arith.constant 1 : index
    %c2_52 = arith.constant 2 : index
    %73 = vector.load %arg9[%c0_50, %c1_51, %c2_52] : memref<8x18x18xf32, #tpu.memory_space<vmem>>, vector<8x16x16xf32>
    %74 = vector.extract_strided_slice %41 {offsets = [5, 0, 0, 0], sizes = [1, 8, 1, 1], strides = [1, 1, 1, 1]} : vector<9x8x1x1xf32> to vector<1x8x1x1xf32>
    %75 = vector.shape_cast %74 : vector<1x8x1x1xf32> to vector<8x1x1xf32>
    %76 = vector.broadcast %75 : vector<8x1x1xf32> to vector<8x16x16xf32>
    %77 = arith.mulf %73, %76 : vector<8x16x16xf32>
    %78 = arith.addf %72, %77 : vector<8x16x16xf32>
    %c0_53 = arith.constant 0 : index
    %c2_54 = arith.constant 2 : index
    %c0_55 = arith.constant 0 : index
    %79 = vector.load %arg9[%c0_53, %c2_54, %c0_55] : memref<8x18x18xf32, #tpu.memory_space<vmem>>, vector<8x16x16xf32>
    %80 = vector.extract_strided_slice %41 {offsets = [6, 0, 0, 0], sizes = [1, 8, 1, 1], strides = [1, 1, 1, 1]} : vector<9x8x1x1xf32> to vector<1x8x1x1xf32>
    %81 = vector.shape_cast %80 : vector<1x8x1x1xf32> to vector<8x1x1xf32>
    %82 = vector.broadcast %81 : vector<8x1x1xf32> to vector<8x16x16xf32>
    %83 = arith.mulf %79, %82 : vector<8x16x16xf32>
    %84 = arith.addf %78, %83 : vector<8x16x16xf32>
    %c0_56 = arith.constant 0 : index
    %c2_57 = arith.constant 2 : index
    %c1_58 = arith.constant 1 : index
    %85 = vector.load %arg9[%c0_56, %c2_57, %c1_58] : memref<8x18x18xf32, #tpu.memory_space<vmem>>, vector<8x16x16xf32>
    %86 = vector.extract_strided_slice %41 {offsets = [7, 0, 0, 0], sizes = [1, 8, 1, 1], strides = [1, 1, 1, 1]} : vector<9x8x1x1xf32> to vector<1x8x1x1xf32>
    %87 = vector.shape_cast %86 : vector<1x8x1x1xf32> to vector<8x1x1xf32>
    %88 = vector.broadcast %87 : vector<8x1x1xf32> to vector<8x16x16xf32>
    %89 = arith.mulf %85, %88 : vector<8x16x16xf32>
    %90 = arith.addf %84, %89 : vector<8x16x16xf32>
    %c0_59 = arith.constant 0 : index
    %c2_60 = arith.constant 2 : index
    %c2_61 = arith.constant 2 : index
    %91 = vector.load %arg9[%c0_59, %c2_60, %c2_61] : memref<8x18x18xf32, #tpu.memory_space<vmem>>, vector<8x16x16xf32>
    %92 = vector.extract_strided_slice %41 {offsets = [8, 0, 0, 0], sizes = [1, 8, 1, 1], strides = [1, 1, 1, 1]} : vector<9x8x1x1xf32> to vector<1x8x1x1xf32>
    %93 = vector.shape_cast %92 : vector<1x8x1x1xf32> to vector<8x1x1xf32>
    %94 = vector.broadcast %93 : vector<8x1x1xf32> to vector<8x16x16xf32>
    %95 = arith.mulf %91, %94 : vector<8x16x16xf32>
    %96 = arith.addf %90, %95 : vector<8x16x16xf32>
    %c0_62 = arith.constant 0 : index
    %c0_63 = arith.constant 0 : index
    %c0_64 = arith.constant 0 : index
    %97 = vector.load %arg7[%c0_62, %c0_63, %c0_64] : memref<8x1x1xf32, #tpu.memory_space<vmem>>, vector<8x1x1xf32>
    %98 = vector.broadcast %97 : vector<8x1x1xf32> to vector<8x16x16xf32>
    %99 = arith.addf %96, %98 : vector<8x16x16xf32>
    %c0_65 = arith.constant 0 : index
    %c0_66 = arith.constant 0 : index
    %c0_67 = arith.constant 0 : index
    %c0_68 = arith.constant 0 : index
    %100 = vector.load %arg8[%c0_65, %c0_66, %c0_67, %c0_68] : memref<1x8x16x16xf32, #tpu.memory_space<vmem>>, vector<1x8x16x16xf32>
    %101 = vector.shape_cast %100 : vector<1x8x16x16xf32> to vector<8x16x16xf32>
    %102 = vector.shape_cast %99 : vector<8x16x16xf32> to vector<1x8x16x16xf32>
    tpu.vector_store %arg8[%c0_65, %c0_66, %c0_67, %c0_68], %102 {strides = array<i32>} : memref<1x8x16x16xf32, #tpu.memory_space<vmem>>, vector<1x8x16x16xf32>,
    return
  }
  func.func @transform_0(%arg0: i32) -> (i32, i32, i32, i32) {
    %c0_i32 = arith.constant 0 : i32
    %c0_i32_0 = arith.constant 0 : i32
    %c0_i32_1 = arith.constant 0 : i32
    %c0_i32_2 = arith.constant 0 : i32
    return %arg0, %c0_i32, %c0_i32_0, %c0_i32_1 : i32, i32, i32, i32
  }
  func.func @transform_1(%arg0: i32) -> (i32, i32) {
    %c0_i32 = arith.constant 0 : i32
    %c0_i32_0 = arith.constant 0 : i32
    %c0_i32_1 = arith.constant 0 : i32
    return %c0_i32, %c0_i32_0 : i32, i32
  }
  func.func @transform_2(%arg0: i32) -> (i32, i32) {
    %c0_i32 = arith.constant 0 : i32
    %c0_i32_0 = arith.constant 0 : i32
    %c0_i32_1 = arith.constant 0 : i32
    return %c0_i32, %c0_i32_0 : i32, i32
  }
  func.func @transform_3(%arg0: i32) -> (i32, i32) {
    %c0_i32 = arith.constant 0 : i32
    %c0_i32_0 = arith.constant 0 : i32
    %c0_i32_1 = arith.constant 0 : i32
    return %c0_i32, %c0_i32_0 : i32, i32
  }
  func.func @transform_4(%arg0: i32) -> (i32, i32) {
    %c0_i32 = arith.constant 0 : i32
    %c0_i32_0 = arith.constant 0 : i32
    %c0_i32_1 = arith.constant 0 : i32
    return %c0_i32, %c0_i32_0 : i32, i32
  }
  func.func @transform_5(%arg0: i32) -> (i32, i32, i32, i32) {
    %c0_i32 = arith.constant 0 : i32
    %c0_i32_0 = arith.constant 0 : i32
    %c0_i32_1 = arith.constant 0 : i32
    %c0_i32_2 = arith.constant 0 : i32
    %c0_i32_3 = arith.constant 0 : i32
    return %c0_i32, %c0_i32_0, %c0_i32_1, %c0_i32_2 : i32, i32, i32, i32
  }
  func.func @transform_6(%arg0: i32) -> (i32, i32, i32) {
    %c0_i32 = arith.constant 0 : i32
    %c0_i32_0 = arith.constant 0 : i32
    %c0_i32_1 = arith.constant 0 : i32
    %c0_i32_2 = arith.constant 0 : i32
    return %c0_i32, %c0_i32_0, %c0_i32_1 : i32, i32, i32
  }
  func.func @transform_7(%arg0: i32) -> (i32, i32, i32, i32) {
    %c0_i32 = arith.constant 0 : i32
    %c0_i32_0 = arith.constant 0 : i32
    %c0_i32_1 = arith.constant 0 : i32
    %c0_i32_2 = arith.constant 0 : i32
    return %arg0, %c0_i32, %c0_i32_0, %c0_i32_1 : i32, i32, i32, i32
  }
}

</mosaic_0001>

<bundles_post_ra>
// kernel: tpu_custom_call.1
= control target key start
LH: loop header
LB: loop body
LE: loop exit
PB: predicated region body
PF: predicated region fallthrough
CT: control target
= control target key end

     0   :  { %s4958_s0 = inlined_call_operand.hbm [shape: f32[2,4,16,16], index: 0, kind: input, shape index: {}]   ;;  %s4959_s1 = inlined_call_operand.hbm [shape: f32[4,1], index: 1, kind: input, shape index: {}]   ;;  %s4960_s2 = inlined_call_operand.hbm [shape: f32[4,1], index: 2, kind: input, shape index: {}]   ;;  %s4961_s3 = inlined_call_operand.hbm [shape: bf16[8,4], index: 3, kind: input, shape index: {}]   ;;  %s4962_s4 = inlined_call_operand.hbm [shape: f32[8,1], index: 4, kind: input, shape index: {}]   ;;  %s4963_s5 = inlined_call_operand.hbm [shape: f32[9,8,1,1], index: 5, kind: input, shape index: {}]   ;;  %s4964_s6 = inlined_call_operand.hbm [shape: f32[8,1,1], index: 6, kind: input, shape index: {}]   ;;  %s4965_s7 = inlined_call_operand.hbm [shape: f32[2,8,16,16], index: 7, kind: output, shape index: {}]  }
   0x1   :  { %5022 = sst [smem:[#allocation72_spill]] %s4959_s1 }
   0x2   :  { %12 = vsyncpa [#allocation4], 0 }
   0x3   :  { %14 = vsyncpa [#allocation4 + $0x1], 0 }
   0x4   :  { %15 = vsyncpa [#allocation7], 0 }
   0x5   :  { %16 = vsyncpa [#allocation10], 0 }
   0x6   :  { %17 = vsyncpa [#allocation13], 0 }
   0x7   :  { %18 = vsyncpa [#allocation5], 0 }
   0x8   :  { %20 = vsyncpa [#allocation5 + $0x1], 0  ;;  %s3470_s24 = smov 0   ;;  %s3472_s25 = smov 0  }
   0x9   :  { %s3474_s26 = smov 0   ;;  %s3476_s27 = smov 0  }
   0xa LB: > { %s3402_s28 = smov [#allocation6]   ;;  %s3491_s30 = sadd.s32 4294967295, %s3400_s27   ;;  %s3400_s27 = sphi %s3476_s27, %s5149_s27   ;;  %s3396_s26 = sphi %s3474_s26, %s5148_s26   ;;  %s3392_s25 = sphi %s3472_s25, %s5147_s25   ;;  %s3388_s24 = sphi %s3470_s24, %s5146_s24  }
   0xb   : > { %s222_s29 = sshll.u32 %s3402_s28, 4  ;;  %p2882_p0 = scmp.ge.s32.totalorder %s3400_s27, 1  ;;  %s223_s29 = int_to_ptr.vmem [resolvable:$true] %s222_s29 }
   0xc   : > { %p4966_p1 = scmp.eq.s32.totalorder %s3491_s30, 0  ;;  %p209_p2 = scmp.lt.s32.totalorder %s3400_s27, 3 }
   0xd   : > { %s3403_s9 = smov [#allocation9]   ;;  %s3404_s11 = smov [#allocation12]  }
   0xe   : > { %p3496_p3 = pnand %p2882_p0, %p209_p2  ;;  %s244_s10 = sshll.u32 %s3403_s9, 4  ;;  %s3503_s10 = int_to_ptr.vmem [resolvable:$true] %s244_s10 }
   0xf   : > { %s265_s12 = sshll.u32 %s3404_s11, 4  ;;  %s5025_s1 = sld [smem:[#allocation72_spill]]  ;;  %s3511_s12 = int_to_ptr.vmem [resolvable:$true] %s265_s12 }
  0x10   : > { %s5023_s8 = scalar_select %p3496_p3, 1, 0 }
  0x11   : > { %p3019_p5 = pneg %p3496_p3 }
  0x13   : > { %p3507_p6 = pnand %p3019_p5, %p4966_p1 }
  0x15   : > { %s3124_s16 = scalar_lea.hbm %s5025_s1, 64  ;;  %p3521_p8 = pneg %p3507_p6 }
  0x16   : > { %p3125_p7 = scmp.ne.s32.totalorder %s5025_s1, %s3124_s16  ;;  %p3131_p11 = scmp.lt.u32.totalorder %s3124_s16, %s5025_s1 }
  0x18   : > { %p3127_p9 = pnand %p3521_p8, %p3125_p7 }
  0x1a   : > { %p3128_p10 = pneg %p3127_p9 }
  0x1c   : > { %p3133_p12 = pnand %p3131_p11, %p3128_p10 }
  0x1e   : > { %3136 = shalt.err (!%p3133_p12)
}
  0x1f   : > { %s3137_s22 = scalar_lea.vmem %s223_s29, 64  ;;  %p3145_p5 = scmp.lt.s32.totalorder %s223_s29, %s223_s29 }
  0x20   : > { %p3138_p13 = scmp.ne.s32.totalorder %s223_s29, %s3137_s22  ;;  %p3146_p4 = scmp.lt.s32.totalorder %s3137_s22, %s3137_s22 }
  0x22   : > { %p3140_p0 = pnand %p3138_p13, %p3521_p8  ;;  %p3147_p1 = por %p3146_p4, %p3145_p5 }
  0x24   : > { %p3141_p2 = pneg %p3140_p0 }
  0x26   : > { %p3148_p3 = pnand %p3147_p1, %p3141_p2 }
  0x28   : > { %3151 = shalt.err (!%p3148_p3)
}
  0x29   : > { %3022 = dma.hbm_to_vmem [thread:$0]  (!%p3507_p6), %s5025_s1, 64, %s223_s29, [#allocation7]  }
  0x2a   : > { %s3152_s14 = scalar_lea.hbm %s4961_s3, 64 }
  0x2b   : > { %p3153_p7 = scmp.ne.s32.totalorder %s4961_s3, %s3152_s14  ;;  %p3159_p1 = scmp.lt.u32.totalorder %s3152_s14, %s4961_s3 }
  0x2d   : > { %p3155_p9 = pnand %p3153_p7, %p3521_p8 }
  0x2f   : > { %p3156_p4 = pneg %p3155_p9 }
  0x31   : > { %p3161_p3 = pnand %p3159_p1, %p3156_p4 }
  0x33   : > { %3164 = shalt.err (!%p3161_p3)
}
  0x34   : > { %s3165_s29 = scalar_lea.vmem %s3503_s10, 64  ;;  %p3173_p13 = scmp.lt.s32.totalorder %s3503_s10, %s3503_s10 }
  0x35   : > { %p3166_p10 = scmp.ne.s32.totalorder %s3503_s10, %s3165_s29  ;;  %p3174_p0 = scmp.lt.s32.totalorder %s3165_s29, %s3165_s29 }
  0x37   : > { %p3168_p11 = pnand %p3166_p10, %p3521_p8  ;;  %p3175_p2 = por %p3174_p0, %p3173_p13 }
  0x39   : > { %p3169_p12 = pneg %p3168_p11 }
  0x3b   : > { %p3176_p5 = pnand %p3175_p2, %p3169_p12 }
  0x3d   : > { %3179 = shalt.err (!%p3176_p5)
}
  0x3e   : > { %3028 = dma.hbm_to_vmem [thread:$0]  (!%p3507_p6), %s4961_s3, 64, %s3503_s10, [#allocation10]  }
  0x3f   : > { %s3180_s28 = scalar_lea.hbm %s4963_s5, 1152 }
  0x40   : > { %p3181_p7 = scmp.ne.s32.totalorder %s4963_s5, %s3180_s28  ;;  %p3187_p1 = scmp.lt.u32.totalorder %s3180_s28, %s4963_s5 }
  0x42   : > { %p3183_p9 = pnand %p3181_p7, %p3521_p8 }
  0x44   : > { %p3184_p4 = pneg %p3183_p9 }
  0x46   : > { %p3189_p3 = pnand %p3187_p1, %p3184_p4 }
  0x48   : > { %3192 = shalt.err (!%p3189_p3)
}
  0x49   : > { %s3193_s10 = scalar_lea.vmem %s3511_s12, 1152  ;;  %p3201_p13 = scmp.lt.s32.totalorder %s3511_s12, %s3511_s12 }
  0x4a   : > { %p3194_p10 = scmp.ne.s32.totalorder %s3511_s12, %s3193_s10  ;;  %p3202_p0 = scmp.lt.s32.totalorder %s3193_s10, %s3193_s10 }
  0x4c   : > { %p3196_p11 = pnand %p3194_p10, %p3521_p8  ;;  %p3203_p2 = por %p3202_p0, %p3201_p13 }
  0x4e   : > { %p3197_p12 = pneg %p3196_p11 }
  0x50   : > { %p3204_p5 = pnand %p3203_p2, %p3197_p12 }
  0x52   : > { %3207 = shalt.err (!%p3204_p5)
}
  0x53   : > { %s3405_s16 = smov 16   ;;  %s3406_s17 = smov 1  }
  0x54   : > { %3034 = dma.hbm_to_vmem [thread:$0]  (!%p3507_p6), %s4963_s5, 1152, %s3511_s12, [#allocation13], %s3405_s16, %s3405_s16, %s3406_s17  }
  0x55   : > { %s3407_s20 = smov [#allocation8]   ;;  %s3408_s22 = smov [#allocation11]  }
  0x56   : > { %s233_s21 = sshll.u32 %s3407_s20, 4  ;;  %s255_s23 = sshll.u32 %s3408_s22, 4  ;;  %s234_s21 = int_to_ptr.vmem [resolvable:$true] %s233_s21  ;;  %s256_s23 = int_to_ptr.vmem [resolvable:$true] %s255_s23 }
  0x57   : > { %s3208_s11 = scalar_lea.hbm %s4960_s2, 64 }
  0x58   : > { %p3209_p7 = scmp.ne.s32.totalorder %s4960_s2, %s3208_s11  ;;  %p3215_p1 = scmp.lt.u32.totalorder %s3208_s11, %s4960_s2 }
  0x5a   : > { %p3211_p9 = pnand %p3209_p7, %p3521_p8 }
  0x5c   : > { %p3212_p4 = pneg %p3211_p9 }
  0x5e   : > { %p3217_p3 = pnand %p3215_p1, %p3212_p4 }
  0x60   : > { %3220 = shalt.err (!%p3217_p3)
}
  0x61   : > { %s3221_s12 = scalar_lea.vmem %s234_s21, 64  ;;  %p3229_p13 = scmp.lt.s32.totalorder %s234_s21, %s234_s21 }
  0x62   : > { %p3222_p10 = scmp.ne.s32.totalorder %s234_s21, %s3221_s12  ;;  %p3230_p0 = scmp.lt.s32.totalorder %s3221_s12, %s3221_s12 }
  0x64   : > { %p3224_p11 = pnand %p3222_p10, %p3521_p8  ;;  %p3231_p2 = por %p3230_p0, %p3229_p13 }
  0x66   : > { %p3225_p12 = pneg %p3224_p11 }
  0x68   : > { %p3232_p5 = pnand %p3231_p2, %p3225_p12 }
  0x6a   : > { %3235 = shalt.err (!%p3232_p5)
}
  0x6b   : > { %3025 = dma.hbm_to_vmem [thread:$0]  (!%p3507_p6), %s4960_s2, 64, %s234_s21, [#allocation7]  }
  0x6c   : > { %s3236_s22 = scalar_lea.hbm %s4962_s4, 128 }
  0x6d   : > { %p3237_p7 = scmp.ne.s32.totalorder %s4962_s4, %s3236_s22  ;;  %p3243_p1 = scmp.lt.u32.totalorder %s3236_s22, %s4962_s4 }
  0x6f   : > { %p3239_p9 = pnand %p3237_p7, %p3521_p8 }
  0x71   : > { %p3240_p4 = pneg %p3239_p9 }
  0x73   : > { %p3245_p3 = pnand %p3243_p1, %p3240_p4 }
  0x75   : > { %3248 = shalt.err (!%p3245_p3)
}
  0x76   : > { %s3249_s15 = scalar_lea.vmem %s256_s23, 128  ;;  %p3257_p13 = scmp.lt.s32.totalorder %s256_s23, %s256_s23 }
  0x77   : > { %p3250_p10 = scmp.ne.s32.totalorder %s256_s23, %s3249_s15  ;;  %p3258_p0 = scmp.lt.s32.totalorder %s3249_s15, %s3249_s15 }
  0x79   : > { %p3252_p11 = pnand %p3250_p10, %p3521_p8  ;;  %p3259_p2 = por %p3258_p0, %p3257_p13 }
  0x7b   : > { %p3253_p12 = pneg %p3252_p11 }
  0x7d   : > { %p3260_p5 = pnand %p3259_p2, %p3253_p12 }
  0x7f   : > { %3263 = shalt.err (!%p3260_p5)
}
  0x80   : > { %3031 = dma.hbm_to_vmem [thread:$0]  (!%p3507_p6), %s4962_s4, 128, %s256_s23, [#allocation10]  }
  0x81   : > { %s3409_s12 = smov [#allocation14]   ;;  %s3264_s20 = scalar_lea.hbm %s4964_s6, 128 }
  0x82   : > { %s278_s18 = sshll.u32 %s3409_s12, 4  ;;  %p3265_p7 = scmp.ne.s32.totalorder %s4964_s6, %s3264_s20  ;;  %s279_s18 = int_to_ptr.vmem [resolvable:$true] %s278_s18 }
  0x83   : > { %p3271_p1 = scmp.lt.u32.totalorder %s3264_s20, %s4964_s6 }
  0x84   : > { %p3267_p9 = pnand %p3265_p7, %p3521_p8 }
  0x86   : > { %p3268_p4 = pneg %p3267_p9 }
  0x88   : > { %p3273_p3 = pnand %p3271_p1, %p3268_p4 }
  0x8a   : > { %3276 = shalt.err (!%p3273_p3)
}
  0x8b   : > { %s3277_s23 = scalar_lea.vmem %s279_s18, 128  ;;  %p3285_p13 = scmp.lt.s32.totalorder %s279_s18, %s279_s18 }
  0x8c   : > { %p3278_p10 = scmp.ne.s32.totalorder %s279_s18, %s3277_s23  ;;  %p3286_p0 = scmp.lt.s32.totalorder %s3277_s23, %s3277_s23 }
  0x8e   : > { %p3280_p11 = pnand %p3278_p10, %p3521_p8  ;;  %p3287_p2 = por %p3286_p0, %p3285_p13 }
  0x90   : > { %p3281_p12 = pneg %p3280_p11 }
  0x92   : > { %p3288_p5 = pnand %p3287_p2, %p3281_p12 }
  0x94   : > { %3291 = shalt.err (!%p3288_p5)
}
  0x95   : > { %3037 = dma.hbm_to_vmem [thread:$0]  (!%p3507_p6), %s4964_s6, 128, %s279_s18, [#allocation13], %s3405_s16, %s3405_s16, %s3406_s17  }
  0x96   : > { %s2881_s13 = sadd.s32 4294967294, %s3400_s27   ;;  %s3645_s19 = sadd.s32 1, %s3400_s27  }
  0x97   : > { %s30_s21 = ssub.s32 %s3400_s27, %s3645_s19  ;;  %s33_s10 = sadd.s32 1, %s3396_s26 }
  0x98   : > { %p31_p8 = scmp.eq.s32.totalorder %s30_s21, 0  ;;  %p40_p7 = scmp.ne.s32.totalorder %s3396_s26, %s3392_s25 }
  0x99   : > { %p41_p9 = scmp.eq.s32.totalorder %s3400_s27, 0  ;;  %p46_p4 = scmp.ne.s32.totalorder %s3392_s25, %s3388_s24 }
  0x9a   : > { %s3656_s12 = scalar_select %p31_p8, %s3396_s26, %s33_s10  }
  0x9b   : > { %p3658_p1 = por %p41_p9, %p40_p7  ;;  %p5028_p3 = scmp.eq.s32.totalorder %s3491_s30, 0 }
  0x9c   : > { %p196_p10 = scmp.eq.s32.totalorder %s3491_s30, 1  ;;  %p202_p11 = scmp.eq.s32.totalorder %s2881_s13, 1 }
  0x9d   : > { %p3664_p6 = por %p5028_p3, %p46_p4  ;;  %p3052_p12 = scmp.lt.s32.totalorder %s3400_s27, 2 }
  0x9e   : > { %s292_s17 = sand.u32 1, %s3396_s26   ;;  %p3671_p13 = por %p196_p10, %p40_p7 }
  0x9f   : > { %p3675_p0 = por %p202_p11, %p46_p4  ;;  %s2890_s20 = sshll.u32 %s292_s17, 6 }
  0xa0   : > { %s5030_s18 = scalar_select %p3671_p13, 1, 0 }
  0xa1   : > { %s5031_s1 = scalar_select %p3675_p0, 1, 0 }
  0xa2   : > { %s2989_s22 = sshll.u32 %s3400_s27, 10  ;;  %s296_s23 = scalar_lea.vmem [#allocation3], %s2890_s20 }
  0xa3   : > { %s3683_s11 = scalar_lea.hbm %s4958_s0, %s2989_s22  ;;  %s303_s14 = sshll.u32 %s296_s23, 4  ;;  %s3685_s14 = int_to_ptr.vmem [resolvable:$true] %s303_s14 }
  0xa4   : > { %p3689_p2 = pnand %p3052_p12, %p3658_p1  ;;  %s3693_s13 = scalar_lea.sflag [#allocation4], %s292_s17 }
  0xa5   : > { %s3292_s21 = scalar_lea.hbm %s3683_s11, 1024  ;;  %s3297_s29 = scalar_lea.hbm %s4958_s0, 2048 }
  0xa6   : > { %p3293_p5 = scmp.ne.s32.totalorder %s3683_s11, %s3292_s21  ;;  %p3294_p8 = pneg %p3689_p2 }
  0xa7   : > { %p3298_p4 = scmp.lt.u32.totalorder %s3683_s11, %s4958_s0  ;;  %p3299_p1 = scmp.lt.u32.totalorder %s3297_s29, %s3292_s21 }
  0xa8   : > { %p3295_p7 = pnand %p3294_p8, %p3293_p5  ;;  %p3301_p10 = scmp.lt.u32.totalorder %s3292_s21, %s3683_s11 }
  0xa9   : > { %p3300_p3 = por %p3299_p1, %p3298_p4 }
  0xaa   : > { %p3296_p9 = pneg %p3295_p7 }
  0xab   : > { %p3302_p11 = por %p3301_p10, %p3300_p3 }
  0xad   : > { %p3303_p12 = pnand %p3302_p11, %p3296_p9 }
  0xaf   : > { %3306 = shalt.err (!%p3303_p12)
}
  0xb0   : > { %s3307_s17 = scalar_lea.vmem %s3685_s14, 1024  ;;  %s3410_s9 = smov [#allocation3]  }
  0xb1   : > { %p3308_p5 = scmp.ne.s32.totalorder %s3685_s14, %s3307_s17  ;;  %s3312_s23 = sshll.u32 %s3410_s9, 4  ;;  %s3313_s23 = int_to_ptr.vmem [resolvable:$false] %s3312_s23 }
  0xb2   : > { %s3314_s10 = scalar_lea.vmem %s3313_s23, 2048  ;;  %p3315_p13 = scmp.lt.s32.totalorder %s3685_s14, %s3313_s23 }
  0xb3   : > { %p3310_p7 = pnand %p3308_p5, %p3294_p8  ;;  %p3316_p4 = scmp.lt.s32.totalorder %s3314_s10, %s3307_s17 }
  0xb5   : > { %p3311_p0 = pneg %p3310_p7  ;;  %p3317_p1 = por %p3316_p4, %p3315_p13 }
  0xb7   : > { %p3318_p3 = pnand %p3317_p1, %p3311_p0 }
  0xb9   : > { %3321 = shalt.err (!%p3318_p3)
}
  0xba   : > { %s3411_s21 = smov 128   ;;  %s3412_s20 = smov 8  }
  0xbb   : > { %3041 = dma.hbm_to_vmem [thread:$0]  (!%p3689_p2), %s3683_s11, 1024, %s3685_s14, %s3693_s13, %s3411_s21, %s3411_s21, %s3412_s20  }
  0xbc   : > { %p5033_p8 = scmp.ne.s32.totalorder %s5023_s8, 0 }
  0xbe   : > { %315 = sbr.rel (%p5033_p8) target bundleno = 1234 (0x4d2), region = 48 }
  0xc5   : > { %s3724_s29 = sand.u32 1, %s3392_s25  }
  0xc6   : > { %s2894_s22 = sshll.u32 %s3724_s29, 6  ;;  %s318_s28 = scalar_lea.sflag [#allocation4], %s3724_s29 }
  0xc7   : > { %s3728_s17 = scalar_lea.vmem [#allocation3], %s2894_s22 }
  0xc8   : > { %3367 = dma.done.wait (%p3664_p6), %s318_s28, 1024  }
  0xc9   : > { %3369 = vsyncadd (%p3664_p6), %s318_s28, 4294966272  ;;  %p5034_p13 = scmp.eq.s32.totalorder %s3491_s30, 0 }
  0xcb   : > { %3371 = dma.done.wait (%p5034_p13), [#allocation7], 128   ;;  %p5035_p0 = pmov %p5034_p13 }
  0xcd   : > { %3373 = vsyncadd (%p5035_p0), [#allocation7], 4294967168  ;;  %p5036_p2 = pmov %p5035_p0 }
  0xce   : > { %p5037_p9 = pmov %p5035_p0 }
  0xcf   : > { %3375 = dma.done.wait (%p5036_p2), [#allocation10], 192  }
  0xd0   : > { %3377 = vsyncadd (%p5037_p9), [#allocation10], 4294967104  ;;  %p5038_p10 = pmov %p5035_p0 }
  0xd1   : > { %p5039_p11 = pmov %p5035_p0 }
  0xd2   : > { %3379 = dma.done.wait (%p5038_p10), [#allocation13], 1280  }
  0xd3   : > { %3381 = vsyncadd (%p5039_p11), [#allocation13], 4294966016  ;;  %v390_v0 = vlaneseq  ;;  %v3413_v1 = vmov 1983009808   ;;  %v3414_v4 = vmov 0   ;;  %v377_v9 = vld [vmem:[%s3728_s17] sm:$0xff] }
  0xd4   : > { %v388_v2 = vunpack.c.l.s4 %v3413_v1  ;;  %3119 = vset.pattern.permute.xlu1 %v3414_v4  ;;  %3118 = vset.pattern.permute.xlu0 %v3414_v4  ;;  %v3415_v6 = vmov 1934713408   ;;  %v379_v10 = vld [vmem:[%s3728_s17 + $0x10] sm:$0xff]  ;;  %v381_v11 = vld [vmem:[%s3728_s17 + $0x20] sm:$0xff]  ;;  %v378_v16 = vld [vmem:[%s3728_s17 + $0x8] sm:$0xff]  ;;  %s3416_s8 = smov 64  }
  0xd5   : > { %v391_v3 = vshrl.u32 %v390_v0, 7  ;;  %v420_v7 = vunpack.c.l.s4 %v3415_v6  ;;  %710 = vmatprep.mubr.bf16.mxu0 %v3414_v4  ;;  %v383_v13 = vld [vmem:[%s3728_s17 + $0x30] sm:$0xff]  ;;  %v386_v14 = vcombine.high %v377_v9, %v381_v11  ;;  %v385_v15 = vcombine.low %v377_v9, %v381_v11  ;;  %v380_v17 = vld [vmem:[%s3728_s17 + $0x18] sm:$0xff]  ;;  %v382_v20 = vld [vmem:[%s3728_s17 + $0x28] sm:$0xff]  ;;  %s3417_s16 = smov 32   ;;  %s3419_s11 = smov 96  }
  0xd6   : > { %v389_v5 = vunpack.c.0.s8 %v388_v2  ;;  %v402_v18 = vcombine.high %v379_v10, %v383_v13  ;;  %v401_v19 = vcombine.low %v379_v10, %v383_v13  ;;  %v384_v21 = vld [vmem:[%s3728_s17 + $0x38] sm:$0xff]  ;;  %v453_v24 = vcombine.low %v378_v16, %v382_v20  ;;  %s3420_s14 = smov 48   ;;  %s3421_s15 = smov 16   ;;  %v650_v60 = vld [vmem:[#allocation8] sm:$0xf]  ;;  %v661_v62 = vld [vmem:[#allocation11] sm:$0xff] }
  0xd7   : > { %v421_v12 = vunpack.c.0.s8 %v420_v7  ;;  %v469_v25 = vcombine.low %v380_v17, %v384_v21  ;;  %v454_v39 = vcombine.high %v378_v16, %v382_v20  ;;  %v470_v40 = vcombine.high %v380_v17, %v384_v21  ;;  %s3422_s13 = smov 80   ;;  %s3423_s9 = smov 112   ;;  %v642_v61 = vld [vmem:[#allocation6] sm:$0xf]  ;;  %v2904_v63 = vld [vmem:[#allocation12] ss:$0 sm:$0xff] }
  0xd8   : > { %v3746_v8 = vsub.s32 %v389_v5, %v391_v3  ;;  %v4969_v46 = vmov 0.0   ;;  %v2905_v0 = vld [vmem:[#allocation12 + $0x1] ss:$0 sm:$0xff]  ;;  %v2906_v1 = vld [vmem:[#allocation12 + $0x2] ss:$0 sm:$0xff]  ;;  %vm577_vm0 = vcmask 130048  }
  0xd9   : > { %v3759_v27 = vsub.s32 %v421_v12, %v391_v3  ;;  %v2907_v2 = vld [vmem:[#allocation12 + $0x3] ss:$0 sm:$0xff]  ;;  %v2908_v3 = vld [vmem:[#allocation12 + $0x4] ss:$0 sm:$0xff]  ;;  %v2909_v4 = vld [vmem:[#allocation12 + $0x5] ss:$0 sm:$0xff] }
  0xda   : > { %v400_v22 = vrot.slane %v386_v14, %v3746_v8  ;;  %v393_v23 = vrot.slane %v385_v15, %v3746_v8  ;;  %v416_v26 = vrot.slane %v402_v18, %v3746_v8  ;;  %v409_v28 = vrot.slane %v401_v19, %v3746_v8  ;;  %v2910_v5 = vld [vmem:[#allocation12 + $0x6] ss:$0 sm:$0xff]  ;;  %v2911_v6 = vld [vmem:[#allocation12 + $0x7] ss:$0 sm:$0xff]  ;;  %v2912_v7 = vld [vmem:[#allocation12 + $0x8] ss:$0 sm:$0xff] }
  0xdb   : > { %v461_v29 = vrot.slane %v453_v24, %v3746_v8  ;;  %v477_v30 = vrot.slane %v469_v25, %v3746_v8  ;;  %v468_v44 = vrot.slane %v454_v39, %v3746_v8  ;;  %v484_v45 = vrot.slane %v470_v40, %v3746_v8  ;;  %v2913_v9 = vld [vmem:[#allocation12 + $0x9] ss:$0 sm:$0xff]  ;;  %v2914_v10 = vld [vmem:[#allocation12 + $0xa] ss:$0 sm:$0xff]  ;;  %v2915_v11 = vld [vmem:[#allocation12 + $0xb] ss:$0 sm:$0xff] }
  0xdc   : > { %v433_v31 = vcombine.low %v400_v22, %v416_v26  ;;  %v418_v32 = vcombine.high %v393_v23, %v409_v28  ;;  %v417_v33 = vcombine.low %v393_v23, %v409_v28  ;;  %v434_v34 = vcombine.high %v400_v22, %v416_v26  ;;  %v2916_v12 = vld [vmem:[#allocation12 + $0xc] ss:$0 sm:$0xff]  ;;  %v2917_v13 = vld [vmem:[#allocation12 + $0xd] ss:$0 sm:$0xff]  ;;  %v2918_v14 = vld [vmem:[#allocation12 + $0xe] ss:$0 sm:$0xff] }
  0xdd   : > { %v486_v35 = vcombine.high %v461_v29, %v477_v30  ;;  %v485_v38 = vcombine.low %v461_v29, %v477_v30  ;;  %v501_v52 = vcombine.low %v468_v44, %v484_v45  ;;  %v502_v53 = vcombine.high %v468_v44, %v484_v45  ;;  %v2919_v15 = vld [vmem:[#allocation12 + $0xf] ss:$0 sm:$0xff]  ;;  %v2920_v16 = vld [vmem:[#allocation12 + $0x10] ss:$0 sm:$0xff]  ;;  %v2921_v17 = vld [vmem:[#allocation12 + $0x11] ss:$0 sm:$0xff] }
  0xde   : > { %v441_v36 = vrot.slane %v433_v31, %v3759_v27  ;;  %v432_v37 = vrot.slane %v418_v32, %v3759_v27  ;;  %v448_v41 = vrot.slane %v434_v34, %v3759_v27  ;;  %v3771_v43 = vrot.slane %v417_v33, %v3759_v27  ;;  %v2922_v18 = vld [vmem:[#allocation12 + $0x12] ss:$0 sm:$0xff]  ;;  %v2923_v19 = vld [vmem:[#allocation12 + $0x13] ss:$0 sm:$0xff]  ;;  %v2924_v20 = vld [vmem:[#allocation12 + $0x14] ss:$0 sm:$0xff] }
  0xdf   : > { %v500_v42 = vrot.slane %v486_v35, %v3759_v27  ;;  %v3781_v49 = vrot.slane %v485_v38, %v3759_v27  ;;  %v509_v56 = vrot.slane %v501_v52, %v3759_v27  ;;  %v516_v58 = vrot.slane %v502_v53, %v3759_v27  ;;  %v2925_v21 = vld [vmem:[#allocation12 + $0x15] ss:$0 sm:$0xff]  ;;  %v2926_v22 = vld [vmem:[#allocation12 + $0x16] ss:$0 sm:$0xff]  ;;  %v2927_v23 = vld [vmem:[#allocation12 + $0x17] ss:$0 sm:$0xff] }
  0xe0   : > { %534 = vrot.lane.b32.xlu1 %v441_v36, %s3416_s8  ;;  %526 = vrot.lane.b32.xlu0 %v432_v37, %s3417_s16  ;;  %v450_v47 = vcombine.high %v432_v37, %v4969_v46  ;;  %v449_v48 = vcombine.high %v3771_v43, %v4969_v46  ;;  %v451_v50 = vcombine.high %v441_v36, %v4969_v46  ;;  %v2928_v24 = vld [vmem:[#allocation12 + $0x18] ss:$0 sm:$0xff]  ;;  %v2929_v25 = vld [vmem:[#allocation12 + $0x19] ss:$0 sm:$0xff]  ;;  %v2930_v26 = vld [vmem:[#allocation12 + $0x1a] ss:$0 sm:$0xff] }
  0xe1   : > { %v517_v51 = vcombine.high %v3781_v49, %v4969_v46  ;;  %v518_v54 = vcombine.high %v500_v42, %v4969_v46  ;;  %v452_v55 = vcombine.high %v448_v41, %v4969_v46  ;;  %v519_v57 = vcombine.high %v509_v56, %v4969_v46  ;;  %v2931_v28 = vld [vmem:[#allocation12 + $0x1b] ss:$0 sm:$0xff]  ;;  %v2932_v29 = vld [vmem:[#allocation12 + $0x1c] ss:$0 sm:$0xff]  ;;  %v2933_v30 = vld [vmem:[#allocation12 + $0x1d] ss:$0 sm:$0xff] }
  0xe2   : > { %v520_v59 = vcombine.high %v516_v58, %v4969_v46  ;;  %v2934_v31 = vld [vmem:[#allocation12 + $0x1e] ss:$0 sm:$0xff]  ;;  %v2935_v32 = vld [vmem:[#allocation12 + $0x1f] ss:$0 sm:$0xff]  ;;  %v2936_v33 = vld [vmem:[#allocation12 + $0x20] ss:$0 sm:$0xff] }
  0xe3   : > { %v2937_v34 = vld [vmem:[#allocation12 + $0x21] ss:$0 sm:$0xff]  ;;  %v2938_v35 = vld [vmem:[#allocation12 + $0x22] ss:$0 sm:$0xff]  ;;  %v2939_v36 = vld [vmem:[#allocation12 + $0x23] ss:$0 sm:$0xff] }
  0xe4   : > { %542 = vrot.lane.b32.xlu1 %v448_v41, %s3419_s11  ;;  %554 = vrot.lane.b32.xlu0 %v500_v42, %s3417_s16  ;;  %v2940_v37 = vld [vmem:[#allocation12 + $0x24] ss:$0 sm:$0xff]  ;;  %v2941_v38 = vld [vmem:[#allocation12 + $0x25] ss:$0 sm:$0xff]  ;;  %v2942_v39 = vld [vmem:[#allocation12 + $0x26] ss:$0 sm:$0xff] }
  0xe5   : > { %v2943_v40 = vld [vmem:[#allocation12 + $0x27] ss:$0 sm:$0xff]  ;;  %v2944_v41 = vld [vmem:[#allocation12 + $0x28] ss:$0 sm:$0xff]  ;;  %v2945_v42 = vld [vmem:[#allocation12 + $0x29] ss:$0 sm:$0xff] }
  0xe6   : > { %v2946_v44 = vld [vmem:[#allocation12 + $0x2a] ss:$0 sm:$0xff]  ;;  %vm579_vm1 = vcmask 261120   ;;  %v2949_v53 = vld [vmem:[#allocation12 + $0x2d] ss:$0 sm:$0xff]  ;;  %vm581_vm2 = vcmask 392192  }
  0xe7   : > { %vm583_vm3 = vcmask 523264   ;;  %vm585_vm4 = vcmask 654336   ;;  %vm587_vm5 = vcmask 785408   ;;  %vm589_vm6 = vcmask 916480   ;;  %s3424_s23 = smov 1   ;;  %s3425_s10 = smov 127  }
  0xe8   : > { %530 = vrot.lane.b32.xlu1 %v450_v47, %s3420_s14  ;;  %522 = vrot.lane.b32.xlu0 %v449_v48, %s3421_s15  ;;  %v2947_v48 = vld [vmem:[#allocation12 + $0x2b] ss:$0 sm:$0xff]  ;;  %vm598_vm7 = vcmask 1043456   ;;  %vm671_vm8 = vcmask 1041408   ;;  %vm667_vm9 = vcmask 31744   ;;  %vm719_vm10 = vcmask 139264  }
  0xe9   : > { %vm736_vm11 = vcmask 7168   ;;  %vm762_vm12 = vcmask 146568   ;;  %vm739_vm13 = vcmask 1024   ;;  %vm765_vm14 = vcmask 140424   ;;  %s3426_s21 = smov 126   ;;  %s2901_s20 = sshll.u32 %s3724_s29, 7 }
  0xea   : > { %vm1168_vm15 = vcmask 138248   ;;  %s4839_s22 = scalar_lea.vmem [#allocation15], %s2901_s20  ;;  %s2990_s28 = sshll.u32 %s3491_s30, 11 }
  0xeb   : > { %s2751_s17 = sshll.u32 %s4839_s22, 4  ;;  %s2738_s30 = scalar_lea.sflag [#allocation5], %s3724_s29  ;;  %s4911_s17 = int_to_ptr.vmem [resolvable:$true] %s2751_s17 }
  0xec   : > { %550 = vrot.lane.b32.xlu1 %v517_v51, %s3421_s15  ;;  %538 = vrot.lane.b32.xlu0 %v451_v50, %s3422_s13  ;;  %v2948_v50 = vld [vmem:[#allocation12 + $0x2c] ss:$0 sm:$0xff]  ;;  %p5143_p12 = scmp.ne.s32.totalorder %s5030_s18, 0 }
  0xf0   : > { %558 = vrot.lane.b32.xlu1 %v518_v54, %s3420_s14  ;;  %546 = vrot.lane.b32.xlu0 %v452_v55, %s3423_s9  ;;  %v2950_v54 = vld [vmem:[#allocation12 + $0x2e] ss:$0 sm:$0xff] }
  0xf4   : > { %566 = vrot.lane.b32.xlu1 %v519_v57, %s3422_s13  ;;  %562 = vrot.lane.b32.xlu0 %v509_v56, %s3416_s8 }
  0xf8   : > { %574 = vrot.lane.b32.xlu1 %v520_v59, %s3423_s9  ;;  %570 = vrot.lane.b32.xlu0 %v516_v58, %s3419_s11 }
  0xfc   : > { %653 = vperm.xlu1 %3119, %v650_v60   ;;  %645 = vperm.xlu0 %3118, %v642_v61   ;;  %v2951_v60 = vld [vmem:[#allocation12 + $0x2f] ss:$0 sm:$0xff]  ;;  %v2952_v61 = vld [vmem:[#allocation12 + $0x30] ss:$0 sm:$0xff] }
 0x100   : > { %664 = vperm.xlu1 %3119, %v661_v62   ;;  %1314 = vperm.xlu0 %3118, %v2904_v63  }
 0x104   : > { %1318 = vperm.xlu1 %3119, %v2905_v0   ;;  %1322 = vperm.xlu0 %3118, %v2906_v1  }
 0x108   : > { %1326 = vperm.xlu1 %3119, %v2907_v2   ;;  %1330 = vperm.xlu0 %3118, %v2908_v3   ;;  %v2954_v2 = vld [vmem:[#allocation12 + $0x32] ss:$0 sm:$0xff] }
 0x10c   : > { %1334 = vperm.xlu1 %3119, %v2909_v4   ;;  %1338 = vperm.xlu0 %3118, %v2910_v5  }
 0x110   : > { %1342 = vperm.xlu1 %3119, %v2911_v6   ;;  %1418 = vperm.xlu0 %3118, %v2912_v7  }
 0x114   : > { %1422 = vperm.xlu1 %3119, %v2913_v9   ;;  %1426 = vperm.xlu0 %3118, %v2914_v10  }
 0x118   : > { %1430 = vperm.xlu1 %3119, %v2915_v11   ;;  %1434 = vperm.xlu0 %3118, %v2916_v12   ;;  %v2955_v12 = vld [vmem:[#allocation12 + $0x33] ss:$0 sm:$0xff] }
 0x11c   : > { %1438 = vperm.xlu1 %3119, %v2917_v13   ;;  %1442 = vperm.xlu0 %3118, %v2918_v14   ;;  %v2956_v13 = vld [vmem:[#allocation12 + $0x34] ss:$0 sm:$0xff] }
 0x120   : > { %1446 = vperm.xlu1 %3119, %v2919_v15   ;;  %1586 = vperm.xlu0 %3118, %v2920_v16  }
 0x124   : > { %1590 = vperm.xlu1 %3119, %v2921_v17   ;;  %1594 = vperm.xlu0 %3118, %v2922_v18  }
 0x128   : > { %1598 = vperm.xlu1 %3119, %v2923_v19   ;;  %1602 = vperm.xlu0 %3118, %v2924_v20   ;;  %v2957_v19 = vld [vmem:[#allocation12 + $0x35] ss:$0 sm:$0xff]  ;;  %v2958_v20 = vld [vmem:[#allocation12 + $0x36] ss:$0 sm:$0xff] }
 0x12c   : > { %1606 = vperm.xlu1 %3119, %v2925_v21   ;;  %1610 = vperm.xlu0 %3118, %v2926_v22  }
 0x130   : > { %1614 = vperm.xlu1 %3119, %v2927_v23   ;;  %1770 = vperm.xlu0 %3118, %v2928_v24  }
 0x134   : > { %1774 = vperm.xlu1 %3119, %v2929_v25   ;;  %1778 = vperm.xlu0 %3118, %v2930_v26  }
 0x138   : > { %1782 = vperm.xlu1 %3119, %v2931_v28   ;;  %1786 = vperm.xlu0 %3118, %v2932_v29  }
 0x13c   : > { %1790 = vperm.xlu1 %3119, %v2933_v30   ;;  %1794 = vperm.xlu0 %3118, %v2934_v31   ;;  %v2959_v30 = vld [vmem:[#allocation12 + $0x37] ss:$0 sm:$0xff]  ;;  %v2960_v31 = vld [vmem:[#allocation12 + $0x38] ss:$0 sm:$0xff] }
 0x140   : > { %1798 = vperm.xlu1 %3119, %v2935_v32   ;;  %1874 = vperm.xlu0 %3118, %v2936_v33  }
 0x144   : > { %1878 = vperm.xlu1 %3119, %v2937_v34   ;;  %1882 = vperm.xlu0 %3118, %v2938_v35  }
 0x148   : > { %1886 = vperm.xlu1 %3119, %v2939_v36   ;;  %1890 = vperm.xlu0 %3118, %v2940_v37   ;;  %v2961_v36 = vld [vmem:[#allocation12 + $0x39] ss:$0 sm:$0xff]  ;;  %v2962_v37 = vld [vmem:[#allocation12 + $0x3a] ss:$0 sm:$0xff] }
 0x14c   : > { %1894 = vperm.xlu1 %3119, %v2941_v38   ;;  %1898 = vperm.xlu0 %3118, %v2942_v39  }
 0x150   : > { %1902 = vperm.xlu1 %3119, %v2943_v40   ;;  %2042 = vperm.xlu0 %3118, %v2944_v41  }
 0x152   : > { %v535_v45 = vpop.permute.xlu1 %534  ;;  %v527_v47 = vpop.permute.xlu0 %526 }
 0x154   : > { %2046 = vperm.xlu1 %3119, %v2945_v42   ;;  %2050 = vperm.xlu0 %3118, %v2946_v44   ;;  %v2963_v42 = vld [vmem:[#allocation12 + $0x3b] ss:$0 sm:$0xff]  ;;  %v2964_v44 = vld [vmem:[#allocation12 + $0x3c] ss:$0 sm:$0xff] }
 0x156   : > { %v543_v51 = vpop.permute.xlu1 %542  ;;  %v555_v52 = vpop.permute.xlu0 %554 }
 0x158   : > { %2054 = vperm.xlu1 %3119, %v2947_v48   ;;  %2058 = vperm.xlu0 %3118, %v2948_v50  }
 0x15a   : > { %v531_v55 = vpop.permute.xlu1 %530  ;;  %v523_v56 = vpop.permute.xlu0 %522 }
 0x15b   : > { %v578_v57 = vsel %vm577_vm0, %v3771_v43, %v523_v56  ;;  %v2953_v43 = vld [vmem:[#allocation12 + $0x31] ss:$0 sm:$0xff] }
 0x15c   : > { %v580_v58 = vsel %vm579_vm1, %v578_v57, %v527_v47  ;;  %2062 = vperm.xlu1 %3119, %v2949_v53   ;;  %2066 = vperm.xlu0 %3118, %v2950_v54   ;;  %v2967_v57 = vld [vmem:[#allocation12 + $0x3f] ss:$0 sm:$0xff] }
 0x15d   : > { %v582_v59 = vsel %vm581_vm2, %v580_v58, %v531_v55  ;;  %v2968_v58 = vld [vmem:[#allocation12 + $0x40] ss:$0 sm:$0xff] }
 0x15e   : > { %v551_v62 = vpop.permute.xlu1 %550  ;;  %v584_v63 = vsel %vm583_vm3, %v582_v59, %v535_v45  ;;  %v539_v0 = vpop.permute.xlu0 %538 }
 0x15f   : > { %v586_v1 = vsel %vm585_vm4, %v584_v63, %v539_v0  ;;  %v591_v3 = vsel %vm577_vm0, %v3781_v49, %v551_v62  ;;  %v2969_v0 = vld [vmem:[#allocation12 + $0x41] ss:$0 sm:$0xff] }
 0x160   : > { %2070 = vperm.xlu1 %3119, %v2951_v60   ;;  %2226 = vperm.xlu0 %3118, %v2952_v61   ;;  %v588_v5 = vsel %vm587_vm5, %v586_v1, %v543_v51  ;;  %v592_v10 = vsel %vm579_vm1, %v591_v3, %v555_v52  ;;  %v2965_v51 = vld [vmem:[#allocation12 + $0x3d] ss:$0 sm:$0xff]  ;;  %v2966_v52 = vld [vmem:[#allocation12 + $0x3e] ss:$0 sm:$0xff]  ;;  %v2970_v1 = vld [vmem:[#allocation12 + $0x42] ss:$0 sm:$0xff] }
 0x162   : > { %v559_v4 = vpop.permute.xlu1 %558  ;;  %v547_v6 = vpop.permute.xlu0 %546 }
 0x163   : > { %v590_v7 = vsel %vm589_vm6, %v588_v5, %v547_v6  ;;  %v593_v14 = vsel %vm581_vm2, %v592_v10, %v559_v4  ;;  %v2971_v5 = vld [vmem:[#allocation12 + $0x43] ss:$0 sm:$0xff]  ;;  %v2972_v6 = vld [vmem:[#allocation12 + $0x44] ss:$0 sm:$0xff] }
 0x164   : > { %v599_v9 = vsel %vm598_vm7, %v590_v7, 0.0  ;;  %2230 = vperm.xlu1 %3119, %v2953_v43   ;;  %2234 = vperm.xlu0 %3118, %v2954_v2  }
 0x165   : > { %v600_v11 = vrot.slane %v599_v9, 4 }
 0x166   : > { %v563_v15 = vpop.permute.xlu0 %562  ;;  %v567_v16 = vpop.permute.xlu1 %566 }
 0x167   : > { %v601_v49 = vadd.f32 %v600_v11, %v599_v9  ;;  %v594_v17 = vsel %vm583_vm3, %v593_v14, %v563_v15  ;;  %v2973_v11 = vld [vmem:[#allocation12 + $0x45] ss:$0 sm:$0xff]  ;;  %v2975_v15 = vld [vmem:[#allocation12 + $0x47] ss:$0 sm:$0xff] }
 0x168   : > { %2238 = vperm.xlu1 %3119, %v2955_v12   ;;  %2242 = vperm.xlu0 %3118, %v2956_v13   ;;  %v595_v21 = vsel %vm585_vm4, %v594_v17, %v567_v16  ;;  %v2974_v12 = vld [vmem:[#allocation12 + $0x46] ss:$0 sm:$0xff]  ;;  %v2976_v16 = vld [vmem:[#allocation14] ss:$0 sm:$0xff]  ;;  %v2977_v17 = vld [vmem:[#allocation14 + $0x1] ss:$0 sm:$0xff] }
 0x169   : > { %v602_v18 = vrot.slane %v601_v49, 2 }
 0x16a   : > { %v571_v22 = vpop.permute.xlu0 %570  ;;  %v575_v23 = vpop.permute.xlu1 %574 }
 0x16b   : > { %v603_v24 = vadd.f32 %v602_v18, %v601_v49  ;;  %v596_v25 = vsel %vm587_vm5, %v595_v21, %v571_v22  ;;  %v2978_v18 = vld [vmem:[#allocation14 + $0x2] ss:$0 sm:$0xff]  ;;  %v2979_v21 = vld [vmem:[#allocation14 + $0x3] ss:$0 sm:$0xff]  ;;  %v2980_v22 = vld [vmem:[#allocation14 + $0x4] ss:$0 sm:$0xff] }
 0x16c   : > { %v597_v26 = vsel %vm589_vm6, %v596_v25, %v575_v23  ;;  %2246 = vperm.xlu1 %3119, %v2957_v19   ;;  %2250 = vperm.xlu0 %3118, %v2958_v20   ;;  %v2981_v25 = vld [vmem:[#allocation14 + $0x5] ss:$0 sm:$0xff] }
 0x16d   : > { %v604_v28 = vrot.slane %v603_v24, 1  ;;  %v606_v29 = vsel %vm598_vm7, %v597_v26, 0.0 }
 0x16e   : > { %v607_v32 = vrot.slane %v606_v29, 4 }
 0x16f   : > { %v605_v33 = vadd.f32 %v604_v28, %v603_v24 }
 0x170   : > { %v608_v34 = vadd.f32 %v607_v32, %v606_v29  ;;  %2254 = vperm.xlu1 %3119, %v2959_v30   ;;  %2330 = vperm.xlu0 %3118, %v2960_v31   ;;  %v2983_v32 = vld [vmem:[#allocation14 + $0x7] ss:$0 sm:$0xff] }
 0x171   : > { %v614_v35 = vmul.f32 0.25, %v605_v33 }
 0x172   : > { %v609_v38 = vrot.slane %v608_v34, 2 }
 0x173   : > { %v616_v39 = vsub.f32 %v590_v7, %v614_v35 }
 0x174   : > { %v610_v40 = vadd.f32 %v609_v38, %v608_v34  ;;  %2334 = vperm.xlu1 %3119, %v2961_v36   ;;  %2338 = vperm.xlu0 %3118, %v2962_v37   ;;  %v658_v38 = vld [vmem:[#allocation9] sm:$0xf] }
 0x175   : > { %v618_v41 = vmul.f32 %v616_v39, %v616_v39 }
 0x176   : > { %v611_v45 = vrot.slane %v610_v40, 1 }
 0x177   : > { %v620_v47 = vsel %vm598_vm7, %v618_v41, 0.0 }
 0x178   : > { %v621_v48 = vrot.slane %v620_v47, 4  ;;  %v612_v50 = vadd.f32 %v611_v45, %v610_v40  ;;  %2342 = vperm.xlu1 %3119, %v2963_v42   ;;  %2346 = vperm.xlu0 %3118, %v2964_v44  }
 0x17a   : > { %v622_v53 = vadd.f32 %v621_v48, %v620_v47  ;;  %v615_v54 = vmul.f32 0.25, %v612_v50 }
 0x17b   : > { %v646_v23 = vpop.permute.xlu0 %645  ;;  %v654_v29 = vpop.permute.xlu1 %653 }
 0x17c   : > { %v623_v55 = vrot.slane %v622_v53, 2  ;;  %v617_v56 = vsub.f32 %v597_v26, %v615_v54  ;;  %2350 = vperm.xlu1 %3119, %v2965_v51   ;;  %2354 = vperm.xlu0 %3118, %v2966_v52   ;;  %v2982_v26 = vld [vmem:[#allocation14 + $0x6] ss:$0 sm:$0xff] }
 0x17e   : > { %v624_v59 = vadd.f32 %v623_v55, %v622_v53  ;;  %v619_v60 = vmul.f32 %v617_v56, %v617_v56 }
 0x17f   : > { %v3822_v40 = vpop.permute.xlu0 %1314 }
 0x180   : > { %v625_v61 = vrot.slane %v624_v59, 1  ;;  %v627_v62 = vsel %vm598_vm7, %v619_v60, 0.0  ;;  %2358 = vperm.xlu1 %3119, %v2967_v57   ;;  %2498 = vperm.xlu0 %3118, %v2968_v58   ;;  %5040 = vst [vmem:[#allocation21_spill] sm:$0xff] %v3822_v40 }
 0x181   : > { %v628_v63 = vrot.slane %v627_v62, 4 }
 0x182   : > { %v626_v43 = vadd.f32 %v625_v61, %v624_v59 }
 0x183   : > { %v629_v2 = vadd.f32 %v628_v63, %v627_v62  ;;  %v3826_v42 = vpop.permute.xlu0 %1322 }
 0x184   : > { %v634_v3 = vmul.f32 0.25, %v626_v43  ;;  %2502 = vperm.xlu1 %3119, %v2969_v0   ;;  %2506 = vperm.xlu0 %3118, %v2970_v1   ;;  %5042 = vst [vmem:[#allocation23_spill] sm:$0xff] %v3826_v42 }
 0x185   : > { %v630_v4 = vrot.slane %v629_v2, 2 }
 0x186   : > { %v636_v7 = vadd.f32 1e-06, %v634_v3 }
 0x187   : > { %v631_v9 = vadd.f32 %v630_v4, %v629_v2  ;;  %v3830_v45 = vpop.permute.xlu0 %1330 }
 0x188   : > { %3120 = vrsqrt.f32 %v636_v7  ;;  %2510 = vperm.xlu1 %3119, %v2971_v5   ;;  %2514 = vperm.xlu0 %3118, %v2972_v6   ;;  %5044 = vst [vmem:[#allocation25_spill] sm:$0xff] %v3830_v45 }
 0x189   : > { %v632_v10 = vrot.slane %v631_v9, 1 }
 0x18b   : > { %v633_v13 = vadd.f32 %v632_v10, %v631_v9  ;;  %v3834_v48 = vpop.permute.xlu0 %1338 }
 0x18c   : > { %2518 = vperm.xlu1 %3119, %v2973_v11   ;;  %2522 = vperm.xlu0 %3118, %v2974_v12   ;;  %5046 = vst [vmem:[#allocation27_spill] sm:$0xff] %v3834_v48 }
 0x18d   : > { %v635_v14 = vmul.f32 0.25, %v633_v13 }
 0x18f   : > { %v637_v49 = vadd.f32 1e-06, %v635_v14  ;;  %v3838_v51 = vpop.permute.xlu0 %1418 }
 0x190   : > { %2526 = vperm.xlu1 %3119, %v2975_v15   ;;  %2674 = vperm.xlu0 %3118, %v2976_v16  }
 0x191   : > { %3122 = vrsqrt.f32 %v637_v49 }
 0x192   : > { %v3121_v19 = vpop.eup %3120 }
 0x193   : > { %v640_v20 = vmul.f32 %v3121_v19, %v616_v39  ;;  %v665_v39 = vpop.permute.xlu1 %664  ;;  %v3842_v53 = vpop.permute.xlu0 %1426 }
 0x194   : > { %2678 = vperm.xlu1 %3119, %v2977_v17   ;;  %2682 = vperm.xlu0 %3118, %v2978_v18  }
 0x195   : > { %v648_v24 = vmul.f32 %v646_v23, %v640_v20 }
 0x197   : > { %v656_v31 = vadd.f32 %v654_v29, %v648_v24  ;;  %v3824_v41 = vpop.permute.xlu1 %1318  ;;  %v3846_v55 = vpop.permute.xlu0 %1434 }
 0x198   : > { %2686 = vperm.xlu1 %3119, %v2979_v21   ;;  %2690 = vperm.xlu0 %3118, %v2980_v22   ;;  %5041 = vst [vmem:[#allocation22_spill] sm:$0xff] %v3824_v41 }
 0x199   : > { %v659_v35 = vpack.c.bf16 %v656_v31, %v656_v31 }
 0x19b   : > { %v3123_v28 = vpop.eup %3122  ;;  %v673_v37 = vsel %vm671_vm8, %v659_v35, 0  ;;  %v3828_v44 = vpop.permute.xlu1 %1326 }
 0x19c   : > { %v641_v30 = vmul.f32 %v3123_v28, %v617_v56  ;;  %2694 = vperm.xlu1 %3119, %v2981_v25   ;;  %2698 = vperm.xlu0 %3118, %v2982_v26   ;;  %5043 = vst [vmem:[#allocation24_spill] sm:$0xff] %v3828_v44  ;;  %v3850_v57 = vpop.permute.xlu0 %1442 }
 0x19e   : > { %v649_v33 = vmul.f32 %v646_v23, %v641_v30 }
 0x19f   : > { %v3832_v47 = vpop.permute.xlu1 %1334 }
 0x1a0   : > { %2702 = vperm.xlu1 %3119, %v2983_v32   ;;  %v657_v34 = vadd.f32 %v654_v29, %v649_v33  ;;  %5045 = vst [vmem:[#allocation26_spill] sm:$0xff] %v3832_v47  ;;  %v3854_v59 = vpop.permute.xlu0 %1586 }
 0x1a2   : > { %v660_v36 = vpack.c.bf16 %v657_v34, %v657_v34 }
 0x1a3   : > { %v3836_v50 = vpop.permute.xlu1 %1342 }
 0x1a4   : > { %2902 = vmatprep.subr.msk.bf16.mxu0 %vm671_vm8, %v660_v36  ;;  %5047 = vst [vmem:[#allocation28_spill] sm:$0xff] %v3836_v50  ;;  %v3858_v61 = vpop.permute.xlu0 %1594 }
 0x1a5   : > { %679 = vmatpush1.bf16.msra.mxu0 %v673_v37 }
 0x1a7   : > { %v3840_v52 = vpop.permute.xlu1 %1422 }
 0x1a8   : > { %2903 = vmatmul.mubr.msk.bf16.vlgmr.msra.gmra.mrb[0].mxu0 %vm667_vm9, %v658_v38  ;;  %v3862_v63 = vpop.permute.xlu0 %1602 }
 0x1ab   : > { %v3844_v54 = vpop.permute.xlu1 %1430 }
 0x1ac   : > { %v3866_v1 = vpop.permute.xlu0 %1610 }
 0x1af   : > { %v3848_v56 = vpop.permute.xlu1 %1438 }
 0x1b0   : > { %v3870_v2 = vpop.permute.xlu0 %1770 }
 0x1b1   : > { %5048 = vst [vmem:[#allocation29_spill] sm:$0xff] %v3870_v2 }
 0x1b3   : > { %v3852_v58 = vpop.permute.xlu1 %1446 }
 0x1b4   : > { %v3874_v4 = vpop.permute.xlu0 %1778 }
 0x1b5   : > { %5050 = vst [vmem:[#allocation31_spill] sm:$0xff] %v3874_v4 }
 0x1b7   : > { %v3856_v60 = vpop.permute.xlu1 %1590 }
 0x1b8   : > { %v3878_v6 = vpop.permute.xlu0 %1786 }
 0x1b9   : > { %5052 = vst [vmem:[#allocation33_spill] sm:$0xff] %v3878_v6 }
 0x1bb   : > { %v3860_v62 = vpop.permute.xlu1 %1598 }
 0x1bc   : > { %v3882_v9 = vpop.permute.xlu0 %1794 }
 0x1bd   : > { %5054 = vst [vmem:[#allocation35_spill] sm:$0xff] %v3882_v9 }
 0x1bf   : > { %v3864_v0 = vpop.permute.xlu1 %1606 }
 0x1c0   : > { %v3886_v11 = vpop.permute.xlu0 %1874 }
 0x1c3   : > { %v3868_v43 = vpop.permute.xlu1 %1614 }
 0x1c4   : > { %v3890_v13 = vpop.permute.xlu0 %1882 }
 0x1c7   : > { %v3872_v3 = vpop.permute.xlu1 %1774 }
 0x1c8   : > { %5049 = vst [vmem:[#allocation30_spill] sm:$0xff] %v3872_v3  ;;  %v3894_v15 = vpop.permute.xlu0 %1890 }
 0x1cb   : > { %v3876_v5 = vpop.permute.xlu1 %1782 }
 0x1cc   : > { %5051 = vst [vmem:[#allocation32_spill] sm:$0xff] %v3876_v5  ;;  %v3898_v49 = vpop.permute.xlu0 %1898 }
 0x1cf   : > { %v3880_v7 = vpop.permute.xlu1 %1790 }
 0x1d0   : > { %5053 = vst [vmem:[#allocation34_spill] sm:$0xff] %v3880_v7  ;;  %v3902_v18 = vpop.permute.xlu0 %2042 }
 0x1d3   : > { %v3884_v10 = vpop.permute.xlu1 %1798 }
 0x1d4   : > { %5055 = vst [vmem:[#allocation36_spill] sm:$0xff] %v3884_v10  ;;  %v3912_v25 = vpop.permute.xlu0 %2050 }
 0x1d7   : > { %v3888_v12 = vpop.permute.xlu1 %1878 }
 0x1d8   : > { %v3920_v28 = vpop.permute.xlu0 %2058 }
 0x1db   : > { %v3892_v14 = vpop.permute.xlu1 %1886 }
 0x1dc   : > { %v3934_v31 = vpop.permute.xlu0 %2066 }
 0x1dd   : > { %5057 = vst [vmem:[#allocation38_spill] sm:$0xff] %v3934_v31 }
 0x1df   : > { %v3896_v16 = vpop.permute.xlu1 %1894 }
 0x1e0   : > { %v3942_v33 = vpop.permute.xlu0 %2226 }
 0x1e1   : > { %5059 = vst [vmem:[#allocation40_spill] sm:$0xff] %v3942_v33 }
 0x1e3   : > { %v3900_v17 = vpop.permute.xlu1 %1902 }
 0x1e4   : > { %v3954_v35 = vpop.permute.xlu0 %2234 }
 0x1e5   : > { %5061 = vst [vmem:[#allocation42_spill] sm:$0xff] %v3954_v35 }
 0x1e7   : > { %v3904_v19 = vpop.permute.xlu1 %2046 }
 0x1e8   : > { %v3958_v37 = vpop.permute.xlu0 %2242 }
 0x1e9   : > { %5063 = vst [vmem:[#allocation44_spill] sm:$0xff] %v3958_v37 }
 0x1eb   : > { %v3914_v26 = vpop.permute.xlu1 %2054 }
 0x1ef   : > { %v3922_v29 = vpop.permute.xlu1 %2062 }
 0x1f0   : > { %5056 = vst [vmem:[#allocation37_spill] sm:$0xff] %v3922_v29 }
 0x1f3   : > { %v3936_v32 = vpop.permute.xlu1 %2070 }
 0x1f4   : > { %5058 = vst [vmem:[#allocation39_spill] sm:$0xff] %v3936_v32 }
 0x1f7   : > { %v3944_v34 = vpop.permute.xlu1 %2230 }
 0x1f8   : > { %5060 = vst [vmem:[#allocation41_spill] sm:$0xff] %v3944_v34 }
 0x1fb   : > { %v3956_v36 = vpop.permute.xlu1 %2238 }
 0x1fc   : > { %5062 = vst [vmem:[#allocation43_spill] sm:$0xff] %v3956_v36  ;;  %v5071_v36 = vmov 0.0  }
 0x1fd   : > { %720 = vst.msk [vmem:[#allocation2] sm:$0x1] %vm719_vm10, %v5071_v36  ;;  %721 = vst.msk [vmem:[#allocation2 + $0x18] sm:$0x1] %vm719_vm10, %v5071_v36 }
 0x1fe   : > { %738 = vst.msk [vmem:[#allocation2 + $0x8] sm:$0xff] %vm736_vm11, %v5071_v36  ;;  %742 = vst.msk [vmem:[#allocation2 + $0x20] sm:$0xff] %vm736_vm11, %v5071_v36 }
 0x1ff   : > { %v3960_v38 = vpop.permute.xlu1 %2246  ;;  %722 = vst.msk [vmem:[#allocation2 + $0x30] sm:$0x1] %vm719_vm10, %v5071_v36  ;;  %723 = vst.msk [vmem:[#allocation2 + $0x48] sm:$0x1] %vm719_vm10, %v5071_v36 }
 0x200   : > { %5064 = vst [vmem:[#allocation45_spill] sm:$0xff] %v3960_v38  ;;  %724 = vst.msk [vmem:[#allocation2 + $0x60] sm:$0x1] %vm719_vm10, %v5071_v36 }
 0x201   : > { %725 = vst.msk [vmem:[#allocation2 + $0x78] sm:$0x1] %vm719_vm10, %v5071_v36  ;;  %726 = vst.msk [vmem:[#allocation2 + $0x90] sm:$0x1] %vm719_vm10, %v5071_v36 }
 0x202   : > { %727 = vst.msk [vmem:[#allocation2 + $0xa8] sm:$0x1] %vm719_vm10, %v5071_v36  ;;  %728 = vst.msk [vmem:[#allocation2 + $0x11] sm:$0x1] %vm719_vm10, %v5071_v36 }
 0x203   : > { %729 = vst.msk [vmem:[#allocation2 + $0x29] sm:$0x1] %vm719_vm10, %v5071_v36  ;;  %730 = vst.msk [vmem:[#allocation2 + $0x41] sm:$0x1] %vm719_vm10, %v5071_v36 }
 0x204   : > { %731 = vst.msk [vmem:[#allocation2 + $0x59] sm:$0x1] %vm719_vm10, %v5071_v36  ;;  %732 = vst.msk [vmem:[#allocation2 + $0x71] sm:$0x1] %vm719_vm10, %v5071_v36 }
 0x205   : > { %733 = vst.msk [vmem:[#allocation2 + $0x89] sm:$0x1] %vm719_vm10, %v5071_v36  ;;  %734 = vst.msk [vmem:[#allocation2 + $0xa1] sm:$0x1] %vm719_vm10, %v5071_v36 }
 0x206   : > { %735 = vst.msk [vmem:[#allocation2 + $0xb9] sm:$0x1] %vm719_vm10, %v5071_v36 }
 0x207   : > { %745 = vst.msk [vmem:[#allocation2 + $0x38] sm:$0xff] %vm736_vm11, %v5071_v36  ;;  %748 = vst.msk [vmem:[#allocation2 + $0x50] sm:$0xff] %vm736_vm11, %v5071_v36 }
 0x208   : > { %751 = vst.msk [vmem:[#allocation2 + $0x68] sm:$0xff] %vm736_vm11, %v5071_v36  ;;  %754 = vst.msk [vmem:[#allocation2 + $0x80] sm:$0xff] %vm736_vm11, %v5071_v36 }
 0x209   : > { %757 = vst.msk [vmem:[#allocation2 + $0x98] sm:$0xff] %vm736_vm11, %v5071_v36  ;;  %760 = vst.msk [vmem:[#allocation2 + $0xb0] sm:$0xff] %vm736_vm11, %v5071_v36 }
 0x20a   : > { %737 = vst.msk [vmem:[#allocation2] sm:$0xff] %vm736_vm11, %v5071_v36  ;;  %741 = vst.msk [vmem:[#allocation2 + $0x18] sm:$0xff] %vm736_vm11, %v5071_v36 }
 0x20b   : > { %764 = vst.msk [vmem:[#allocation2 + $0x8] sm:$0xff] %vm762_vm12, %v5071_v36  ;;  %768 = vst.msk [vmem:[#allocation2 + $0x20] sm:$0xff] %vm762_vm12, %v5071_v36 }
 0x20c   : > { %744 = vst.msk [vmem:[#allocation2 + $0x30] sm:$0xff] %vm736_vm11, %v5071_v36  ;;  %747 = vst.msk [vmem:[#allocation2 + $0x48] sm:$0xff] %vm736_vm11, %v5071_v36 }
 0x20d   : > { %750 = vst.msk [vmem:[#allocation2 + $0x60] sm:$0xff] %vm736_vm11, %v5071_v36  ;;  %753 = vst.msk [vmem:[#allocation2 + $0x78] sm:$0xff] %vm736_vm11, %v5071_v36 }
 0x20e   : > { %756 = vst.msk [vmem:[#allocation2 + $0x90] sm:$0xff] %vm736_vm11, %v5071_v36  ;;  %759 = vst.msk [vmem:[#allocation2 + $0xa8] sm:$0xff] %vm736_vm11, %v5071_v36 }
 0x20f   : > { %771 = vst.msk [vmem:[#allocation2 + $0x38] sm:$0xff] %vm762_vm12, %v5071_v36  ;;  %774 = vst.msk [vmem:[#allocation2 + $0x50] sm:$0xff] %vm762_vm12, %v5071_v36 }
 0x210   : > { %777 = vst.msk [vmem:[#allocation2 + $0x68] sm:$0xff] %vm762_vm12, %v5071_v36  ;;  %780 = vst.msk [vmem:[#allocation2 + $0x80] sm:$0xff] %vm762_vm12, %v5071_v36 }
 0x211   : > { %783 = vst.msk [vmem:[#allocation2 + $0x98] sm:$0xff] %vm762_vm12, %v5071_v36  ;;  %786 = vst.msk [vmem:[#allocation2 + $0xb0] sm:$0xff] %vm762_vm12, %v5071_v36 }
 0x212   : > { %763 = vst.msk [vmem:[#allocation2] sm:$0xff] %vm762_vm12, %v5071_v36  ;;  %767 = vst.msk [vmem:[#allocation2 + $0x18] sm:$0xff] %vm762_vm12, %v5071_v36 }
 0x213   : > { %770 = vst.msk [vmem:[#allocation2 + $0x30] sm:$0xff] %vm762_vm12, %v5071_v36  ;;  %773 = vst.msk [vmem:[#allocation2 + $0x48] sm:$0xff] %vm762_vm12, %v5071_v36 }
 0x214   : > { %776 = vst.msk [vmem:[#allocation2 + $0x60] sm:$0xff] %vm762_vm12, %v5071_v36  ;;  %779 = vst.msk [vmem:[#allocation2 + $0x78] sm:$0xff] %vm762_vm12, %v5071_v36 }
 0x215   : > { %782 = vst.msk [vmem:[#allocation2 + $0x90] sm:$0xff] %vm762_vm12, %v5071_v36  ;;  %785 = vst.msk [vmem:[#allocation2 + $0xa8] sm:$0xff] %vm762_vm12, %v5071_v36 }
 0x216   : > { %740 = vst.msk [vmem:[#allocation2 + $0x10] sm:$0x3] %vm739_vm13, %v5071_v36  ;;  %743 = vst.msk [vmem:[#allocation2 + $0x28] sm:$0x3] %vm739_vm13, %v5071_v36 }
 0x217   : > { %746 = vst.msk [vmem:[#allocation2 + $0x40] sm:$0x3] %vm739_vm13, %v5071_v36  ;;  %749 = vst.msk [vmem:[#allocation2 + $0x58] sm:$0x3] %vm739_vm13, %v5071_v36 }
 0x218   : > { %752 = vst.msk [vmem:[#allocation2 + $0x70] sm:$0x3] %vm739_vm13, %v5071_v36  ;;  %755 = vst.msk [vmem:[#allocation2 + $0x88] sm:$0x3] %vm739_vm13, %v5071_v36 }
 0x219   : > { %758 = vst.msk [vmem:[#allocation2 + $0xa0] sm:$0x3] %vm739_vm13, %v5071_v36  ;;  %761 = vst.msk [vmem:[#allocation2 + $0xb8] sm:$0x3] %vm739_vm13, %v5071_v36 }
 0x21a   : > { %766 = vst.msk [vmem:[#allocation2 + $0x10] sm:$0x3] %vm765_vm14, %v5071_v36  ;;  %769 = vst.msk [vmem:[#allocation2 + $0x28] sm:$0x3] %vm765_vm14, %v5071_v36 }
 0x21b   : > { %772 = vst.msk [vmem:[#allocation2 + $0x40] sm:$0x3] %vm765_vm14, %v5071_v36  ;;  %775 = vst.msk [vmem:[#allocation2 + $0x58] sm:$0x3] %vm765_vm14, %v5071_v36 }
 0x21c   : > { %778 = vst.msk [vmem:[#allocation2 + $0x70] sm:$0x3] %vm765_vm14, %v5071_v36  ;;  %781 = vst.msk [vmem:[#allocation2 + $0x88] sm:$0x3] %vm765_vm14, %v5071_v36 }
 0x21d   : > { %784 = vst.msk [vmem:[#allocation2 + $0xa0] sm:$0x3] %vm765_vm14, %v5071_v36  ;;  %787 = vst.msk [vmem:[#allocation2 + $0xb8] sm:$0x3] %vm765_vm14, %v5071_v36 }
 0x27b   : > { %v712_v20 = vpop.f32.mrb[0].mxu0 }
 0x27c   : > { %v3906_v21 = vadd.f32 %v712_v20, %v665_v39  ;;  %v714_v22 = vpop.f32.mrb[1].mxu0  ;;  %v3964_v20 = vpop.permute.xlu1 %2254 }
 0x27d   : > { %v716_v23 = vpop.f32.mrb[2].mxu0  ;;  %v3928_v30 = vadd.f32 %v714_v22, %v665_v39  ;;  %v3962_v39 = vpop.permute.xlu0 %2250  ;;  %5066 = vst [vmem:[#allocation47_spill] sm:$0xff] %v3964_v20 }
 0x27e   : > { %v717_v24 = vpop.f32.mrb[3].mxu0  ;;  %792 = vrot.lane.b32.xlu1 %v3906_v21, %s3419_s11  ;;  %789 = vrot.lane.b32.xlu0 %v3906_v21, %s3423_s9  ;;  %5065 = vst [vmem:[#allocation46_spill] sm:$0xff] %v3962_v39 }
 0x280   : > { %v3968_v23 = vpop.permute.xlu1 %2334 }
 0x281   : > { %v3966_v22 = vpop.permute.xlu0 %2330  ;;  %5068 = vst [vmem:[#allocation49_spill] sm:$0xff] %v3968_v23 }
 0x282   : > { %798 = vrot.lane.b32.xlu1 %v3906_v21, %s3416_s8  ;;  %795 = vrot.lane.b32.xlu0 %v3906_v21, %s3422_s13  ;;  %5067 = vst [vmem:[#allocation48_spill] sm:$0xff] %v3966_v22 }
 0x284   : > { %v3972_v46 = vpop.permute.xlu1 %2342 }
 0x285   : > { %v3970_v24 = vpop.permute.xlu0 %2338  ;;  %5070 = vst [vmem:[#allocation51_spill] sm:$0xff] %v3972_v46 }
 0x286   : > { %804 = vrot.lane.b32.xlu1 %v3906_v21, %s3417_s16  ;;  %801 = vrot.lane.b32.xlu0 %v3906_v21, %s3420_s14  ;;  %5069 = vst [vmem:[#allocation50_spill] sm:$0xff] %v3970_v24 }
 0x288   : > { %v4072_v39 = vpop.permute.xlu1 %2350 }
 0x289   : > { %v4070_v20 = vpop.permute.xlu0 %2346  ;;  %5073 = vst [vmem:[#allocation53_spill] sm:$0xff] %v4072_v39 }
 0x28a   : > { %811 = vrot.lane.b32.xlu1 %v3928_v30, %s3423_s9  ;;  %807 = vrot.lane.b32.xlu0 %v3906_v21, %s3421_s15  ;;  %5072 = vst [vmem:[#allocation52_spill] sm:$0xff] %v4070_v20 }
 0x28c   : > { %v4076_v37 = vpop.permute.xlu1 %2358 }
 0x28d   : > { %v4074_v38 = vpop.permute.xlu0 %2354  ;;  %5075 = vst [vmem:[#allocation55_spill] sm:$0xff] %v4076_v37 }
 0x28e   : > { %817 = vrot.lane.b32.xlu1 %v3928_v30, %s3422_s13  ;;  %814 = vrot.lane.b32.xlu0 %v3928_v30, %s3419_s11  ;;  %5074 = vst [vmem:[#allocation54_spill] sm:$0xff] %v4074_v38  ;;  %s4909_s11 = scalar_lea.hbm %s4965_s7, %s2990_s28 }
 0x290   : > { %v4080_v34 = vpop.permute.xlu1 %2502 }
 0x291   : > { %v4078_v35 = vpop.permute.xlu0 %2498  ;;  %5077 = vst [vmem:[#allocation57_spill] sm:$0xff] %v4080_v34 }
 0x292   : > { %823 = vrot.lane.b32.xlu1 %v3928_v30, %s3420_s14  ;;  %820 = vrot.lane.b32.xlu0 %v3928_v30, %s3416_s8  ;;  %5076 = vst [vmem:[#allocation56_spill] sm:$0xff] %v4078_v35  ;;  %s3322_s14 = scalar_lea.vmem %s4911_s17, 2048 }
 0x293   : > { %p3323_p6 = scmp.ne.s32.totalorder %s4911_s17, %s3322_s14 }
 0x294   : > { %v4084_v10 = vpop.permute.xlu1 %2510 }
 0x295   : > { %v4082_v33 = vpop.permute.xlu0 %2506  ;;  %5079 = vst [vmem:[#allocation59_spill] sm:$0xff] %v4084_v10  ;;  %p3324_p5 = pnand %p3323_p6, %p5143_p12 }
 0x296   : > { %829 = vrot.lane.b32.xlu1 %v3928_v30, %s3421_s15  ;;  %826 = vrot.lane.b32.xlu0 %v3928_v30, %s3417_s16  ;;  %5078 = vst [vmem:[#allocation58_spill] sm:$0xff] %v4082_v33  ;;  %s3427_s15 = smov [#allocation15]  }
 0x297   : > { %p3325_p7 = pneg %p3324_p5  ;;  %s3326_s13 = sshll.u32 %s3427_s15, 4  ;;  %s3327_s13 = int_to_ptr.vmem [resolvable:$false] %s3326_s13 }
 0x298   : > { %v4088_v7 = vpop.permute.xlu1 %2518  ;;  %s3328_s9 = scalar_lea.vmem %s3327_s13, 4096  ;;  %p3329_p4 = scmp.lt.s32.totalorder %s4911_s17, %s3327_s13 }
 0x299   : > { %v4086_v9 = vpop.permute.xlu0 %2514  ;;  %5081 = vst [vmem:[#allocation61_spill] sm:$0xff] %v4088_v7  ;;  %p3330_p1 = scmp.lt.s32.totalorder %s3328_s9, %s3322_s14 }
 0x29a   : > { %5080 = vst [vmem:[#allocation60_spill] sm:$0xff] %v4086_v9 }
 0x29b   : > { %p3331_p3 = por %p3330_p1, %p3329_p4 }
 0x29c   : > { %v4092_v5 = vpop.permute.xlu1 %2526 }
 0x29d   : > { %v4090_v6 = vpop.permute.xlu0 %2522  ;;  %5083 = vst [vmem:[#allocation63_spill] sm:$0xff] %v4092_v5  ;;  %p3332_p8 = pnand %p3331_p3, %p3325_p7 }
 0x29e   : > { %5082 = vst [vmem:[#allocation62_spill] sm:$0xff] %v4090_v6 }
 0x2a0   : > { %v4096_v3 = vpop.permute.xlu1 %2678 }
 0x2a1   : > { %v4094_v4 = vpop.permute.xlu0 %2674  ;;  %5085 = vst [vmem:[#allocation65_spill] sm:$0xff] %v4096_v3 }
 0x2a2   : > { %5084 = vst [vmem:[#allocation64_spill] sm:$0xff] %v4094_v4 }
 0x2a4   : > { %v4100_v35 = vpop.permute.xlu1 %2686 }
 0x2a5   : > { %v4098_v37 = vpop.permute.xlu0 %2682  ;;  %5087 = vst [vmem:[#allocation67_spill] sm:$0xff] %v4100_v35 }
 0x2a6   : > { %5086 = vst [vmem:[#allocation66_spill] sm:$0xff] %v4098_v37 }
 0x2a8   : > { %v4104_v33 = vpop.permute.xlu1 %2694 }
 0x2a9   : > { %v4102_v34 = vpop.permute.xlu0 %2690  ;;  %5089 = vst [vmem:[#allocation69_spill] sm:$0xff] %v4104_v33 }
 0x2aa   : > { %5088 = vst [vmem:[#allocation68_spill] sm:$0xff] %v4102_v34 }
 0x2ac   : > { %v4108_v9 = vpop.permute.xlu1 %2702 }
 0x2ad   : > { %v4106_v10 = vpop.permute.xlu0 %2698  ;;  %5091 = vst [vmem:[#allocation71_spill] sm:$0xff] %v4108_v9 }
 0x2ae   : > { %5090 = vst [vmem:[#allocation70_spill] sm:$0xff] %v4106_v10 }
 0x2f0   : > { %v793_v7 = vpop.permute.xlu1 %792  ;;  %v790_v6 = vpop.permute.xlu0 %789 }
 0x2f1   : > { %v832_v3 = vcombine.low %v3906_v21, %v793_v7 }
 0x2f3   : > { %v840_v33 = vrot.slane %v832_v3, %v3746_v8 }
 0x2f4   : > { %v799_v38 = vpop.permute.xlu1 %798  ;;  %v796_v5 = vpop.permute.xlu0 %795 }
 0x2f5   : > { %v848_v2 = vcombine.low %v790_v6, %v796_v5  ;;  %v849_v42 = vcombine.high %v790_v6, %v796_v5 }
 0x2f7   : > { %v856_v37 = vrot.slane %v848_v2, %v3746_v8 }
 0x2f8   : > { %v805_v4 = vpop.permute.xlu1 %804  ;;  %v802_v39 = vpop.permute.xlu0 %801 }
 0x2f9   : > { %v864_v35 = vcombine.low %v799_v38, %v805_v4  ;;  %v896_v50 = vcombine.low %v840_v33, %v856_v37  ;;  %v865_v31 = vcombine.high %v799_v38, %v805_v4  ;;  %v897_v41 = vcombine.high %v840_v33, %v856_v37 }
 0x2fa   : > { %v4146_v33 = vrot.slane %v849_v42, %v3746_v8 }
 0x2fb   : > { %v872_v9 = vrot.slane %v864_v35, %v3746_v8  ;;  %v904_v45 = vrot.slane %v896_v50, %v3759_v27  ;;  %v879_v37 = vrot.slane %v865_v31, %v3746_v8 }
 0x2fc   : > { %v4112_v20 = vpop.permute.xlu1 %811  ;;  %v808_v34 = vpop.permute.xlu0 %807 }
 0x2fd   : > { %v880_v10 = vcombine.low %v802_v39, %v808_v34  ;;  %v881_v22 = vcombine.high %v802_v39, %v808_v34 }
 0x2ff   : > { %v888_v46 = vrot.slane %v880_v10, %v3746_v8  ;;  %v4140_v50 = vrot.slane %v881_v22, %v3746_v8 }
 0x300   : > { %v4117_v48 = vpop.permute.xlu1 %817  ;;  %v4119_v24 = vpop.permute.xlu0 %814 }
 0x301   : > { %v928_v47 = vcombine.low %v872_v9, %v888_v46  ;;  %v984_v2 = vcombine.low %v4112_v20, %v4117_v48  ;;  %v968_v23 = vcombine.low %v3928_v30, %v4119_v24  ;;  %v929_v10 = vcombine.high %v872_v9, %v888_v46 }
 0x303   : > { %v936_v3 = vrot.slane %v928_v47, %v3759_v27  ;;  %v4132_v29 = vrot.slane %v984_v2, %v3746_v8  ;;  %v4135_v40 = vrot.slane %v968_v23, %v3746_v8  ;;  %v833_v47 = vcombine.high %v3906_v21, %v793_v7 }
 0x304   : > { %v4127_v44 = vpop.permute.xlu1 %823  ;;  %v4129_v35 = vpop.permute.xlu0 %820  ;;  %v943_v9 = vrot.slane %v929_v10, %v3759_v27 }
 0x305   : > { %v960_v32 = vcombine.low %v904_v45, %v936_v3  ;;  %v961_v6 = vcombine.high %v904_v45, %v936_v3  ;;  %v1032_v7 = vcombine.low %v4135_v40, %v4132_v29  ;;  %v911_v45 = vrot.slane %v897_v41, %v3759_v27 }
 0x306   : > { %v847_v42 = vrot.slane %v833_v47, %v3746_v8  ;;  %v944_v41 = vcombine.low %v879_v37, %v4140_v50 }
 0x307   : > { %1120 = vrot.lane.b32.xlu0 %v960_v32, %s3424_s23  ;;  %v962_v38 = vcombine.low %v911_v45, %v943_v9  ;;  %v1040_v22 = vrot.slane %v1032_v7, %v3759_v27  ;;  %v963_v2 = vcombine.high %v911_v45, %v943_v9  ;;  %v1033_v7 = vcombine.high %v4135_v40, %v4132_v29 }
 0x308   : > { %v830_v34 = vpop.permute.xlu1 %829  ;;  %v827_v46 = vpop.permute.xlu0 %826  ;;  %v912_v39 = vcombine.low %v847_v42, %v4146_v33  ;;  %v952_v3 = vrot.slane %v944_v41, %v3759_v27 }
 0x309   : > { %v1016_v5 = vcombine.low %v4127_v44, %v830_v34  ;;  %v1000_v4 = vcombine.low %v4129_v35, %v827_v46  ;;  %v1017_v10 = vcombine.high %v4127_v44, %v830_v34  ;;  %v1001_v47 = vcombine.high %v4129_v35, %v827_v46 }
 0x30a   : > { %v920_v36 = vrot.slane %v912_v39, %v3759_v27  ;;  %v945_v44 = vcombine.high %v879_v37, %v4140_v50  ;;  %v1047_v29 = vrot.slane %v1033_v7, %v3759_v27 }
 0x30b   : > { %v1024_v21 = vrot.slane %v1016_v5, %v3746_v8  ;;  %v1008_v32 = vrot.slane %v1000_v4, %v3746_v8  ;;  %1124 = vrot.lane.b32.xlu0 %v961_v6, %s3424_s23  ;;  %v985_v6 = vcombine.high %v4112_v20, %v4117_v48  ;;  %v1031_v34 = vrot.slane %v1017_v10, %v3746_v8 }
 0x30c   : > { %v964_v35 = vcombine.low %v920_v36, %v952_v3  ;;  %v1015_v46 = vrot.slane %v1001_v47, %v3746_v8  ;;  %v913_v20 = vcombine.high %v847_v42, %v4146_v33  ;;  %v965_v50 = vcombine.high %v920_v36, %v952_v3 }
 0x30d   : > { %v1064_v31 = vcombine.low %v1008_v32, %v1024_v21  ;;  %v1065_v5 = vcombine.high %v1008_v32, %v1024_v21  ;;  %v959_v21 = vrot.slane %v945_v44, %v3759_v27 }
 0x30e   : > { %v927_v33 = vrot.slane %v913_v20, %v3759_v27 }
 0x30f   : > { %1128 = vrot.lane.b32.xlu0 %v962_v38, %s3424_s23  ;;  %v1072_v23 = vrot.slane %v1064_v31, %v3759_v27  ;;  %v969_v38 = vcombine.high %v3928_v30, %v4119_v24  ;;  %v1079_v48 = vrot.slane %v1065_v5, %v3759_v27  ;;  %v999_v30 = vrot.slane %v985_v6, %v3746_v8 }
 0x310   : > { %v1080_v24 = vcombine.low %v1015_v46, %v1031_v34  ;;  %v966_v45 = vcombine.low %v927_v33, %v959_v21  ;;  %v1081_v31 = vcombine.high %v1015_v46, %v1031_v34  ;;  %v967_v39 = vcombine.high %v927_v33, %v959_v21 }
 0x311   : > { %v1096_v4 = vcombine.low %v1040_v22, %v1072_v23  ;;  %v1097_v9 = vcombine.high %v1040_v22, %v1072_v23  ;;  %v983_v40 = vrot.slane %v969_v38, %v3746_v8  ;;  %v1098_v37 = vcombine.low %v1047_v29, %v1079_v48 }
 0x312   : > { %v1099_v8 = vcombine.high %v1047_v29, %v1079_v48  ;;  %v1088_v42 = vrot.slane %v1080_v24, %v3759_v27  ;;  %v1095_v3 = vrot.slane %v1081_v31, %v3759_v27 }
 0x313   : > { %1132 = vrot.lane.b32.xlu0 %v963_v2, %s3424_s23  ;;  %1122 = vrot.lane.b32.xlu1 %v1096_v4, %s3424_s23  ;;  %v1048_v32 = vcombine.low %v983_v40, %v999_v30  ;;  %v1049_v23 = vcombine.high %v983_v40, %v999_v30 }
 0x315   : > { %v1056_v41 = vrot.slane %v1048_v32, %v3759_v27  ;;  %v1063_v10 = vrot.slane %v1049_v23, %v3759_v27 }
 0x317   : > { %1136 = vrot.lane.b32.xlu0 %v964_v35, %s3424_s23  ;;  %1126 = vrot.lane.b32.xlu1 %v1097_v9, %s3424_s23  ;;  %v1100_v22 = vcombine.low %v1056_v41, %v1088_v42  ;;  %v1101_v2 = vcombine.high %v1056_v41, %v1088_v42  ;;  %v1102_v47 = vcombine.low %v1063_v10, %v1095_v3 }
 0x318   : > { %v1103_v5 = vcombine.high %v1063_v10, %v1095_v3 }
 0x31b   : > { %1140 = vrot.lane.b32.xlu0 %v965_v50, %s3424_s23  ;;  %1130 = vrot.lane.b32.xlu1 %v1098_v37, %s3424_s23 }
 0x31f   : > { %1144 = vrot.lane.b32.xlu0 %v966_v45, %s3424_s23  ;;  %1134 = vrot.lane.b32.xlu1 %v1099_v8, %s3424_s23 }
 0x323   : > { %1148 = vrot.lane.b32.xlu0 %v967_v39, %s3424_s23  ;;  %1138 = vrot.lane.b32.xlu1 %v1100_v22, %s3424_s23 }
 0x327   : > { %1142 = vrot.lane.b32.xlu1 %v1101_v2, %s3424_s23 }
 0x32b   : > { %1146 = vrot.lane.b32.xlu1 %v1102_v47, %s3424_s23 }
 0x32f   : > { %1150 = vrot.lane.b32.xlu1 %v1103_v5, %s3424_s23 }
 0x379   : > { %v1121_v4 = vpop.permute.xlu0 %1120 }
 0x37a   : > { %1169 = vst.msk [vmem:[#allocation2 + $0x1] sm:$0xff] %vm1168_vm15, %v1121_v4 }
 0x37d   : > { %v1125_v36 = vpop.permute.xlu0 %1124 }
 0x37e   : > { %1171 = vst.msk [vmem:[#allocation2 + $0x19] sm:$0xff] %vm1168_vm15, %v1125_v36 }
 0x381   : > { %v1129_v6 = vpop.permute.xlu0 %1128  ;;  %v4224_v38 = vld [vmem:[#allocation2] sm:$0xff] }
 0x382   : > { %1173 = vst.msk [vmem:[#allocation2 + $0x31] sm:$0xff] %vm1168_vm15, %v1129_v6  ;;  %v1449_v27 = vmul.f32 %v3838_v51, %v4224_v38 }
 0x384   : > { %1481 = vrot.lane.b32.xlu0 %v1449_v27, %s3425_s10 }
 0x385   : > { %v1123_v7 = vpop.permute.xlu1 %1122  ;;  %v1133_v44 = vpop.permute.xlu0 %1132  ;;  %v4230_v35 = vld [vmem:[#allocation2 + $0x18] sm:$0xff] }
 0x386   : > { %1170 = vst.msk [vmem:[#allocation2 + $0x9] sm:$0xff] %vm1168_vm15, %v1123_v7  ;;  %1175 = vst.msk [vmem:[#allocation2 + $0x49] sm:$0xff] %vm1168_vm15, %v1133_v44  ;;  %v1451_v34 = vmul.f32 %v3840_v52, %v4230_v35  ;;  %v1617_v44 = vmul.f32 %v3854_v59, %v4224_v38 }
 0x388   : > { %1485 = vrot.lane.b32.xlu0 %v1451_v34, %s3425_s10 }
 0x389   : > { %v1127_v46 = vpop.permute.xlu1 %1126  ;;  %v1137_v9 = vpop.permute.xlu0 %1136  ;;  %v4237_v48 = vld [vmem:[#allocation2 + $0x30] sm:$0xff] }
 0x38a   : > { %1172 = vst.msk [vmem:[#allocation2 + $0x21] sm:$0xff] %vm1168_vm15, %v1127_v46  ;;  %1177 = vst.msk [vmem:[#allocation2 + $0x61] sm:$0xff] %vm1168_vm15, %v1137_v9  ;;  %v1453_v20 = vmul.f32 %v3842_v53, %v4237_v48  ;;  %v1619_v46 = vmul.f32 %v3856_v60, %v4230_v35 }
 0x38c   : > { %1489 = vrot.lane.b32.xlu0 %v1453_v20, %s3425_s10  ;;  %v1621_v20 = vmul.f32 %v3858_v61, %v4237_v48 }
 0x38d   : > { %v1131_v30 = vpop.permute.xlu1 %1130  ;;  %v1141_v40 = vpop.permute.xlu0 %1140  ;;  %v4244_v29 = vld [vmem:[#allocation2 + $0x8] sm:$0xff] }
 0x38e   : > { %v4246_v24 = vld [vmem:[#allocation2 + $0x48] sm:$0xff]  ;;  %1174 = vst.msk [vmem:[#allocation2 + $0x39] sm:$0xff] %vm1168_vm15, %v1131_v30  ;;  %1179 = vst.msk [vmem:[#allocation2 + $0x79] sm:$0xff] %vm1168_vm15, %v1141_v40  ;;  %v1450_v50 = vmul.f32 %v3838_v51, %v4244_v29 }
 0x38f   : > { %v1455_v37 = vmul.f32 %v3844_v54, %v4246_v24  ;;  %v1623_v30 = vmul.f32 %v3860_v62, %v4246_v24 }
 0x390   : > { %1483 = vrot.lane.b32.xlu1 %v1450_v50, %s3425_s10 }
 0x391   : > { %1493 = vrot.lane.b32.xlu0 %v1455_v37, %s3425_s10  ;;  %v1135_v21 = vpop.permute.xlu1 %1134  ;;  %v1145_v32 = vpop.permute.xlu0 %1144  ;;  %v4256_v33 = vld [vmem:[#allocation2 + $0x20] sm:$0xff] }
 0x392   : > { %v4258_v45 = vld [vmem:[#allocation2 + $0x60] sm:$0xff]  ;;  %1176 = vst.msk [vmem:[#allocation2 + $0x51] sm:$0xff] %vm1168_vm15, %v1135_v21  ;;  %1181 = vst.msk [vmem:[#allocation2 + $0x91] sm:$0xff] %vm1168_vm15, %v1145_v32  ;;  %v1452_v51 = vmul.f32 %v3840_v52, %v4256_v33 }
 0x393   : > { %v1457_v8 = vmul.f32 %v3846_v55, %v4258_v45  ;;  %v1625_v40 = vmul.f32 %v3862_v63, %v4258_v45  ;;  %v4355_v32 = vld [vmem:[#allocation2 + $0x1] sm:$0xff] }
 0x394   : > { %1487 = vrot.lane.b32.xlu1 %v1452_v51, %s3425_s10  ;;  %v1905_v51 = vmul.f32 %v3886_v11, %v4355_v32 }
 0x395   : > { %1497 = vrot.lane.b32.xlu0 %v1457_v8, %s3425_s10  ;;  %v1139_v42 = vpop.permute.xlu1 %1138  ;;  %v1149_v41 = vpop.permute.xlu0 %1148  ;;  %v4268_v31 = vld [vmem:[#allocation2 + $0x38] sm:$0xff] }
 0x396   : > { %v4270_v39 = vld [vmem:[#allocation2 + $0x78] sm:$0xff]  ;;  %1178 = vst.msk [vmem:[#allocation2 + $0x69] sm:$0xff] %vm1168_vm15, %v1139_v42  ;;  %1183 = vst.msk [vmem:[#allocation2 + $0xa9] sm:$0xff] %vm1168_vm15, %v1149_v41  ;;  %v1454_v52 = vmul.f32 %v3842_v53, %v4268_v31 }
 0x397   : > { %v1459_v22 = vmul.f32 %v3848_v56, %v4270_v39  ;;  %v1627_v50 = vmul.f32 %v3864_v0, %v4270_v39  ;;  %v4363_v8 = vld [vmem:[#allocation2 + $0x19] sm:$0xff]  ;;  %v4371_v41 = vld [vmem:[#allocation2 + $0x31] sm:$0xff] }
 0x398   : > { %1491 = vrot.lane.b32.xlu1 %v1454_v52, %s3425_s10  ;;  %v1907_v42 = vmul.f32 %v3888_v12, %v4363_v8  ;;  %v1909_v52 = vmul.f32 %v3890_v13, %v4371_v41 }
 0x399   : > { %1501 = vrot.lane.b32.xlu0 %v1459_v22, %s3425_s10  ;;  %v1143_v23 = vpop.permute.xlu1 %1142  ;;  %v4280_v2 = vld [vmem:[#allocation2 + $0x50] sm:$0xff] }
 0x39a   : > { %v4282_v3 = vld [vmem:[#allocation2 + $0x90] sm:$0xff]  ;;  %1180 = vst.msk [vmem:[#allocation2 + $0x81] sm:$0xff] %vm1168_vm15, %v1143_v23  ;;  %v1456_v10 = vmul.f32 %v3844_v54, %v4280_v2 }
 0x39b   : > { %v1461_v53 = vmul.f32 %v3850_v57, %v4282_v3  ;;  %v1629_v37 = vmul.f32 %v3866_v1, %v4282_v3  ;;  %v4379_v22 = vld [vmem:[#allocation2 + $0x9] sm:$0xff] }
 0x39c   : > { %1495 = vrot.lane.b32.xlu1 %v1456_v10, %s3425_s10  ;;  %v4381_v23 = vld [vmem:[#allocation2 + $0x49] sm:$0xff] }
 0x39d   : > { %1505 = vrot.lane.b32.xlu0 %v1461_v53, %s3425_s10  ;;  %v1147_v47 = vpop.permute.xlu1 %1146  ;;  %v4291_v5 = vld [vmem:[#allocation2 + $0x68] sm:$0xff]  ;;  %v1911_v10 = vmul.f32 %v3892_v14, %v4381_v23 }
 0x39e   : > { %v4293_v4 = vld [vmem:[#allocation2 + $0xa8] sm:$0xff]  ;;  %1182 = vst.msk [vmem:[#allocation2 + $0x99] sm:$0xff] %vm1168_vm15, %v1147_v47  ;;  %v1458_v36 = vmul.f32 %v3846_v55, %v4291_v5 }
 0x39f   : > { %v1463_v54 = vmul.f32 %v3852_v58, %v4293_v4  ;;  %v1631_v21 = vmul.f32 %v3868_v43, %v4293_v4  ;;  %v4389_v53 = vld [vmem:[#allocation2 + $0x21] sm:$0xff] }
 0x3a0   : > { %1499 = vrot.lane.b32.xlu1 %v1458_v36, %s3425_s10  ;;  %v1908_v47 = vmul.f32 %v3888_v12, %v4389_v53  ;;  %v4411_v12 = vld [vmem:[#allocation2 + $0x91] sm:$0xff] }
 0x3a1   : > { %1509 = vrot.lane.b32.xlu0 %v1463_v54, %s3425_s10  ;;  %v1151_v6 = vpop.permute.xlu1 %1150  ;;  %v4302_v27 = vld [vmem:[#allocation2 + $0x80] sm:$0xff] }
 0x3a2   : > { %1184 = vst.msk [vmem:[#allocation2 + $0xb1] sm:$0xff] %vm1168_vm15, %v1151_v6  ;;  %v1460_v7 = vmul.f32 %v3848_v56, %v4302_v27  ;;  %v4399_v54 = vld [vmem:[#allocation2 + $0x39] sm:$0xff] }
 0x3a3   : > { %v1910_v6 = vmul.f32 %v3890_v13, %v4399_v54  ;;  %v4421_v13 = vld [vmem:[#allocation2 + $0xa9] sm:$0xff] }
 0x3a4   : > { %1503 = vrot.lane.b32.xlu1 %v1460_v7, %s3425_s10 }
 0x3a5   : > { %1649 = vrot.lane.b32.xlu0 %v1617_v44, %s3426_s21  ;;  %v4311_v55 = vld [vmem:[#allocation2 + $0x98] sm:$0xff] }
 0x3a6   : > { %v1462_v34 = vmul.f32 %v3850_v57, %v4311_v55  ;;  %v1618_v57 = vmul.f32 %v3854_v59, %v4244_v29  ;;  %v1622_v59 = vmul.f32 %v3858_v61, %v4268_v31  ;;  %v1626_v61 = vmul.f32 %v3862_v63, %v4291_v5  ;;  %v4409_v44 = vld [vmem:[#allocation2 + $0x51] sm:$0xff] }
 0x3a7   : > { %v1630_v63 = vmul.f32 %v3866_v1, %v4311_v55  ;;  %v1906_v1 = vmul.f32 %v3886_v11, %v4379_v22  ;;  %v4401_v11 = vld [vmem:[#allocation2 + $0x79] sm:$0xff] }
 0x3a8   : > { %1507 = vrot.lane.b32.xlu1 %v1462_v34, %s3425_s10  ;;  %v1915_v7 = vmul.f32 %v3896_v16, %v4401_v11  ;;  %v1912_v34 = vmul.f32 %v3892_v14, %v4409_v44 }
 0x3a9   : > { %1653 = vrot.lane.b32.xlu0 %v1619_v46, %s3426_s21  ;;  %v4319_v56 = vld [vmem:[#allocation2 + $0xb0] sm:$0xff]  ;;  %v1917_v46 = vmul.f32 %v3898_v49, %v4411_v12 }
 0x3aa   : > { %v1464_v9 = vmul.f32 %v3852_v58, %v4319_v56  ;;  %v1620_v58 = vmul.f32 %v3856_v60, %v4256_v33  ;;  %v1624_v60 = vmul.f32 %v3860_v62, %v4280_v2  ;;  %v1628_v62 = vmul.f32 %v3864_v0, %v4302_v27 }
 0x3ab   : > { %v1632_v0 = vmul.f32 %v3868_v43, %v4319_v56  ;;  %v4391_v43 = vld [vmem:[#allocation2 + $0x61] sm:$0xff] }
 0x3ac   : > { %1511 = vrot.lane.b32.xlu1 %v1464_v9, %s3425_s10  ;;  %v1913_v36 = vmul.f32 %v3894_v15, %v4391_v43  ;;  %v4419_v9 = vld [vmem:[#allocation2 + $0x69] sm:$0xff] }
 0x3ad   : > { %1657 = vrot.lane.b32.xlu0 %v1621_v20, %s3426_s21  ;;  %v1914_v20 = vmul.f32 %v3894_v15, %v4419_v9 }
 0x3b0   : > { %1651 = vrot.lane.b32.xlu1 %v1618_v57, %s3426_s21  ;;  %v1919_v57 = vmul.f32 %v3900_v17, %v4421_v13 }
 0x3b1   : > { %1661 = vrot.lane.b32.xlu0 %v1623_v30, %s3426_s21  ;;  %v4429_v30 = vld [vmem:[#allocation2 + $0x81] sm:$0xff] }
 0x3b2   : > { %v1916_v14 = vmul.f32 %v3896_v16, %v4429_v30 }
 0x3b4   : > { %1655 = vrot.lane.b32.xlu1 %v1620_v58, %s3426_s21  ;;  %v2073_v58 = vmul.f32 %v3902_v18, %v4355_v32 }
 0x3b5   : > { %1665 = vrot.lane.b32.xlu0 %v1625_v40, %s3426_s21  ;;  %v4437_v40 = vld [vmem:[#allocation2 + $0x99] sm:$0xff] }
 0x3b6   : > { %v1918_v15 = vmul.f32 %v3898_v49, %v4437_v40  ;;  %v2074_v49 = vmul.f32 %v3902_v18, %v4379_v22 }
 0x3b8   : > { %1659 = vrot.lane.b32.xlu1 %v1622_v59, %s3426_s21  ;;  %v2075_v59 = vmul.f32 %v3904_v19, %v4363_v8 }
 0x3b9   : > { %1669 = vrot.lane.b32.xlu0 %v1627_v50, %s3426_s21  ;;  %v4445_v50 = vld [vmem:[#allocation2 + $0xb1] sm:$0xff] }
 0x3ba   : > { %v1920_v16 = vmul.f32 %v3900_v17, %v4445_v50  ;;  %v2076_v17 = vmul.f32 %v3904_v19, %v4389_v53  ;;  %v5094_v19 = vld [vmem:[#allocation22_spill] sm:$0xff] }
 0x3bc   : > { %1663 = vrot.lane.b32.xlu1 %v1624_v60, %s3426_s21  ;;  %v2077_v60 = vmul.f32 %v3912_v25, %v4371_v41 }
 0x3bd   : > { %1673 = vrot.lane.b32.xlu0 %v1629_v37, %s3426_s21  ;;  %v2079_v37 = vmul.f32 %v3914_v26, %v4381_v23 }
 0x3c0   : > { %1667 = vrot.lane.b32.xlu1 %v1626_v61, %s3426_s21  ;;  %v2081_v61 = vmul.f32 %v3920_v28, %v4391_v43 }
 0x3c1   : > { %1677 = vrot.lane.b32.xlu0 %v1631_v21, %s3426_s21  ;;  %v5092_v21 = vld [vmem:[#allocation21_spill] sm:$0xff] }
 0x3c2   : > { %v1345_v18 = vmul.f32 %v5092_v21, %v4224_v38  ;;  %v2080_v38 = vmul.f32 %v3914_v26, %v4409_v44 }
 0x3c4   : > { %1671 = vrot.lane.b32.xlu1 %v1628_v62, %s3426_s21 }
 0x3c5   : > { %1937 = vrot.lane.b32.xlu0 %v1905_v51, %s3425_s10  ;;  %v2078_v51 = vmul.f32 %v3912_v25, %v4399_v54 }
 0x3c8   : > { %1675 = vrot.lane.b32.xlu1 %v1630_v63, %s3426_s21  ;;  %v5093_v63 = vld [vmem:[#allocation37_spill] sm:$0xff] }
 0x3c9   : > { %1941 = vrot.lane.b32.xlu0 %v1907_v42, %s3425_s10  ;;  %v2083_v42 = vmul.f32 %v5093_v63, %v4401_v11 }
 0x3cc   : > { %1679 = vrot.lane.b32.xlu1 %v1632_v0, %s3426_s21 }
 0x3cd   : > { %1945 = vrot.lane.b32.xlu0 %v1909_v52, %s3425_s10  ;;  %v1347_v52 = vmul.f32 %v5094_v19, %v4230_v35  ;;  %v2082_v35 = vmul.f32 %v3920_v28, %v4419_v9  ;;  %v2084_v28 = vmul.f32 %v5093_v63, %v4429_v30 }
 0x3d0   : > { %1939 = vrot.lane.b32.xlu1 %v1906_v1, %s3425_s10 }
 0x3d1   : > { %1949 = vrot.lane.b32.xlu0 %v1911_v10, %s3425_s10  ;;  %v5095_v10 = vld [vmem:[#allocation38_spill] sm:$0xff] }
 0x3d4   : > { %1943 = vrot.lane.b32.xlu1 %v1908_v47, %s3425_s10  ;;  %v2085_v47 = vmul.f32 %v5095_v10, %v4411_v12 }
 0x3d5   : > { %1953 = vrot.lane.b32.xlu0 %v1913_v36, %s3425_s10  ;;  %v5096_v36 = vld [vmem:[#allocation23_spill] sm:$0xff] }
 0x3d8   : > { %1947 = vrot.lane.b32.xlu1 %v1910_v6, %s3425_s10  ;;  %v1349_v6 = vmul.f32 %v5096_v36, %v4237_v48  ;;  %v5098_v48 = vld [vmem:[#allocation24_spill] sm:$0xff] }
 0x3d9   : > { %1957 = vrot.lane.b32.xlu0 %v1915_v7, %s3425_s10 }
 0x3dc   : > { %1951 = vrot.lane.b32.xlu1 %v1912_v34, %s3425_s10  ;;  %v5097_v34 = vld [vmem:[#allocation39_spill] sm:$0xff] }
 0x3dd   : > { %1961 = vrot.lane.b32.xlu0 %v1917_v46, %s3425_s10  ;;  %v2087_v46 = vmul.f32 %v5097_v34, %v4421_v13 }
 0x3e0   : > { %1955 = vrot.lane.b32.xlu1 %v1914_v20, %s3425_s10  ;;  %v4495_v20 = vld [vmem:[#allocation2 + $0x2] sm:$0xff] }
 0x3e1   : > { %1965 = vrot.lane.b32.xlu0 %v1919_v57, %s3425_s10  ;;  %v1346_v57 = vmul.f32 %v5092_v21, %v4244_v29  ;;  %v1348_v29 = vmul.f32 %v5094_v19, %v4256_v33  ;;  %v1350_v33 = vmul.f32 %v5096_v36, %v4268_v31  ;;  %v1352_v31 = vmul.f32 %v5098_v48, %v4280_v2 }
 0x3e4   : > { %1959 = vrot.lane.b32.xlu1 %v1916_v14, %s3425_s10  ;;  %v1351_v14 = vmul.f32 %v5098_v48, %v4246_v24  ;;  %v5100_v24 = vld [vmem:[#allocation25_spill] sm:$0xff] }
 0x3e5   : > { %2105 = vrot.lane.b32.xlu0 %v2073_v58, %s3426_s21  ;;  %v1354_v2 = vmul.f32 %v5100_v24, %v4291_v5 }
 0x3e8   : > { %1963 = vrot.lane.b32.xlu1 %v1918_v15, %s3425_s10 }
 0x3e9   : > { %2109 = vrot.lane.b32.xlu0 %v2075_v59, %s3426_s21  ;;  %v5099_v59 = vld [vmem:[#allocation48_spill] sm:$0xff] }
 0x3ec   : > { %1967 = vrot.lane.b32.xlu1 %v1920_v16, %s3425_s10  ;;  %v2361_v16 = vmul.f32 %v5099_v59, %v4495_v20 }
 0x3ed   : > { %2113 = vrot.lane.b32.xlu0 %v2077_v60, %s3426_s21 }
 0x3f0   : > { %2107 = vrot.lane.b32.xlu1 %v2074_v49, %s3426_s21 }
 0x3f1   : > { %2117 = vrot.lane.b32.xlu0 %v2079_v37, %s3426_s21  ;;  %v4511_v37 = vld [vmem:[#allocation2 + $0x1a] sm:$0xff] }
 0x3f4   : > { %2111 = vrot.lane.b32.xlu1 %v2076_v17, %s3426_s21  ;;  %v1353_v17 = vmul.f32 %v5100_v24, %v4258_v45  ;;  %v5102_v45 = vld [vmem:[#allocation26_spill] sm:$0xff] }
 0x3f5   : > { %2121 = vrot.lane.b32.xlu0 %v2081_v61, %s3426_s21  ;;  %v1355_v19 = vmul.f32 %v5102_v45, %v4270_v39  ;;  %v5104_v39 = vld [vmem:[#allocation27_spill] sm:$0xff]  ;;  %v1356_v5 = vmul.f32 %v5102_v45, %v4302_v27 }
 0x3f6   : > { %v1482_v62 = vpop.permute.xlu0 %1481  ;;  %v1357_v36 = vmul.f32 %v5104_v39, %v4282_v3  ;;  %v5106_v3 = vld [vmem:[#allocation28_spill] sm:$0xff]  ;;  %v1358_v27 = vmul.f32 %v5104_v39, %v4311_v55  ;;  %v5111_v55 = vld [vmem:[#allocation30_spill] sm:$0xff] }
 0x3f7   : > { %v4473_v0 = vadd.f32 %v1482_v62, %v1345_v18  ;;  %v2086_v18 = vmul.f32 %v5095_v10, %v4437_v40  ;;  %v5101_v62 = vld [vmem:[#allocation49_spill] sm:$0xff]  ;;  %v2088_v10 = vmul.f32 %v5097_v34, %v4445_v50  ;;  %v1359_v48 = vmul.f32 %v5106_v3, %v4293_v4 }
 0x3f8   : > { %2115 = vrot.lane.b32.xlu1 %v2078_v51, %s3426_s21  ;;  %v2363_v51 = vmul.f32 %v5101_v62, %v4511_v37  ;;  %v1803_v39 = vmul.f32 %v5111_v55, %v4363_v8 }
 0x3f9   : > { %2125 = vrot.lane.b32.xlu0 %v2083_v42, %s3426_s21 }
 0x3fa   : > { %v1486_v1 = vpop.permute.xlu0 %1485 }
 0x3fb   : > { %v4483_v25 = vadd.f32 %v1486_v1, %v1347_v52  ;;  %v4527_v52 = vld [vmem:[#allocation2 + $0x32] sm:$0xff] }
 0x3fc   : > { %2119 = vrot.lane.b32.xlu1 %v2080_v38, %s3426_s21 }
 0x3fd   : > { %2129 = vrot.lane.b32.xlu0 %v2085_v47, %s3426_s21  ;;  %v5103_v47 = vld [vmem:[#allocation50_spill] sm:$0xff] }
 0x3fe   : > { %v1490_v7 = vpop.permute.xlu0 %1489 }
 0x3ff   : > { %v4493_v26 = vadd.f32 %v1490_v7, %v1349_v6  ;;  %v2365_v6 = vmul.f32 %v5103_v47, %v4527_v52 }
 0x400   : > { %2123 = vrot.lane.b32.xlu1 %v2082_v35, %s3426_s21 }
 0x401   : > { %2133 = vrot.lane.b32.xlu0 %v2087_v46, %s3426_s21  ;;  %v4543_v46 = vld [vmem:[#allocation2 + $0xa] sm:$0xff] }
 0x402   : > { %v1484_v58 = vpop.permute.xlu1 %1483 }
 0x403   : > { %v1494_v15 = vpop.permute.xlu0 %1493  ;;  %v4507_v60 = vadd.f32 %v1484_v58, %v1346_v57  ;;  %v4545_v57 = vld [vmem:[#allocation2 + $0x4a] sm:$0xff]  ;;  %v2362_v58 = vmul.f32 %v5099_v59, %v4543_v46 }
 0x404   : > { %v4509_v49 = vadd.f32 %v1494_v15, %v1351_v14  ;;  %2127 = vrot.lane.b32.xlu1 %v2084_v28, %s3426_s21  ;;  %v5105_v15 = vld [vmem:[#allocation51_spill] sm:$0xff] }
 0x405   : > { %2393 = vrot.lane.b32.xlu0 %v2361_v16, %s3425_s10  ;;  %v2367_v28 = vmul.f32 %v5105_v15, %v4545_v57 }
 0x406   : > { %v1488_v61 = vpop.permute.xlu1 %1487 }
 0x407   : > { %v1498_v21 = vpop.permute.xlu0 %1497  ;;  %v4523_v63 = vadd.f32 %v1488_v61, %v1348_v29  ;;  %v4563_v61 = vld [vmem:[#allocation2 + $0x62] sm:$0xff] }
 0x408   : > { %v4525_v42 = vadd.f32 %v1498_v21, %v1353_v17  ;;  %2131 = vrot.lane.b32.xlu1 %v2086_v18, %s3426_s21  ;;  %v4561_v17 = vld [vmem:[#allocation2 + $0x22] sm:$0xff] }
 0x409   : > { %2397 = vrot.lane.b32.xlu0 %v2363_v51, %s3425_s10  ;;  %v2364_v18 = vmul.f32 %v5101_v62, %v4561_v17  ;;  %v5107_v51 = vld [vmem:[#allocation52_spill] sm:$0xff] }
 0x40a   : > { %v1492_v1 = vpop.permute.xlu1 %1491 }
 0x40b   : > { %v1502_v38 = vpop.permute.xlu0 %1501  ;;  %v4539_v7 = vadd.f32 %v1492_v1, %v1350_v33  ;;  %v2369_v33 = vmul.f32 %v5107_v51, %v4563_v61 }
 0x40c   : > { %v4541_v35 = vadd.f32 %v1502_v38, %v1355_v19  ;;  %2135 = vrot.lane.b32.xlu1 %v2088_v10, %s3426_s21  ;;  %v4579_v38 = vld [vmem:[#allocation2 + $0x3a] sm:$0xff] }
 0x40d   : > { %2401 = vrot.lane.b32.xlu0 %v2365_v6, %s3425_s10  ;;  %v4581_v10 = vld [vmem:[#allocation2 + $0x7a] sm:$0xff]  ;;  %v2366_v62 = vmul.f32 %v5103_v47, %v4579_v38  ;;  %v5108_v6 = vld [vmem:[#allocation53_spill] sm:$0xff] }
 0x40e   : > { %v1496_v34 = vpop.permute.xlu1 %1495 }
 0x40f   : > { %v1506_v14 = vpop.permute.xlu0 %1505  ;;  %v4557_v16 = vadd.f32 %v1496_v34, %v1352_v31  ;;  %v2371_v31 = vmul.f32 %v5108_v6, %v4581_v10 }
 0x410   : > { %v4559_v29 = vadd.f32 %v1506_v14, %v1357_v36  ;;  %2395 = vrot.lane.b32.xlu1 %v2362_v58, %s3425_s10  ;;  %v4594_v14 = vld [vmem:[#allocation2 + $0x52] sm:$0xff] }
 0x411   : > { %2405 = vrot.lane.b32.xlu0 %v2367_v28, %s3425_s10  ;;  %v4596_v58 = vld [vmem:[#allocation2 + $0x92] sm:$0xff]  ;;  %v5109_v28 = vld [vmem:[#allocation29_spill] sm:$0xff] }
 0x412   : > { %v1500_v59 = vpop.permute.xlu1 %1499 }
 0x413   : > { %v1510_v21 = vpop.permute.xlu0 %1509  ;;  %v4575_v19 = vadd.f32 %v1500_v59, %v1354_v2  ;;  %v1801_v2 = vmul.f32 %v5109_v28, %v4355_v32  ;;  %v5110_v59 = vld [vmem:[#allocation54_spill] sm:$0xff] }
 0x414   : > { %v4577_v1 = vadd.f32 %v1510_v21, %v1359_v48  ;;  %2399 = vrot.lane.b32.xlu1 %v2364_v18, %s3425_s10  ;;  %v2373_v21 = vmul.f32 %v5110_v59, %v4596_v58 }
 0x415   : > { %2409 = vrot.lane.b32.xlu0 %v2369_v33, %s3425_s10  ;;  %v4613_v33 = vld [vmem:[#allocation2 + $0x6a] sm:$0xff] }
 0x416   : > { %v1504_v4 = vpop.permute.xlu1 %1503 }
 0x417   : > { %v1650_v24 = vpop.permute.xlu0 %1649  ;;  %v4591_v36 = vadd.f32 %v1504_v4, %v1356_v5  ;;  %v4615_v5 = vld [vmem:[#allocation2 + $0xaa] sm:$0xff] }
 0x418   : > { %v1697_v34 = vadd.f32 %v1650_v24, %v4473_v0  ;;  %2403 = vrot.lane.b32.xlu1 %v2366_v62, %s3425_s10  ;;  %v2368_v0 = vmul.f32 %v5105_v15, %v4594_v14  ;;  %v1360_v15 = vmul.f32 %v5106_v3, %v4319_v56 }
 0x419   : > { %2413 = vrot.lane.b32.xlu0 %v2371_v31, %s3425_s10  ;;  %v5112_v31 = vld [vmem:[#allocation55_spill] sm:$0xff] }
 0x41a   : > { %v4604_v45 = vadd.f32 %v1801_v2, %v1697_v34  ;;  %v1508_v47 = vpop.permute.xlu1 %1507  ;;  %v2375_v34 = vmul.f32 %v5112_v31, %v4615_v5 }
 0x41b   : > { %v1654_v48 = vpop.permute.xlu0 %1653  ;;  %v4610_v18 = vadd.f32 %v1508_v47, %v1358_v27  ;;  %v4632_v27 = vld [vmem:[#allocation2 + $0x82] sm:$0xff]  ;;  %v5113_v47 = vld [vmem:[#allocation31_spill] sm:$0xff] }
 0x41c   : > { %v1699_v32 = vadd.f32 %v1654_v48, %v4483_v25  ;;  %2407 = vrot.lane.b32.xlu1 %v2368_v0, %s3425_s10  ;;  %v2370_v25 = vmul.f32 %v5107_v51, %v4613_v33  ;;  %v1805_v48 = vmul.f32 %v5113_v47, %v4371_v41  ;;  %v2372_v0 = vmul.f32 %v5108_v6, %v4632_v27 }
 0x41d   : > { %2417 = vrot.lane.b32.xlu0 %v2373_v21, %s3425_s10  ;;  %v5114_v21 = vld [vmem:[#allocation56_spill] sm:$0xff]  ;;  %v1802_v41 = vmul.f32 %v5109_v28, %v4379_v22  ;;  %v4664_v28 = vld [vmem:[#allocation2 + $0xb2] sm:$0xff] }
 0x41e   : > { %v4623_v4 = vadd.f32 %v1803_v39, %v1699_v32  ;;  %v1512_v24 = vpop.permute.xlu1 %1511  ;;  %v2529_v32 = vmul.f32 %v5114_v21, %v4495_v20 }
 0x41f   : > { %v1658_v62 = vpop.permute.xlu0 %1657  ;;  %v4629_v2 = vadd.f32 %v1512_v24, %v1360_v15  ;;  %v4646_v15 = vld [vmem:[#allocation2 + $0x9a] sm:$0xff] }
 0x420   : > { %v1701_v8 = vadd.f32 %v1658_v62, %v4493_v26  ;;  %2411 = vrot.lane.b32.xlu1 %v2370_v25, %s3425_s10  ;;  %v5115_v24 = vld [vmem:[#allocation32_spill] sm:$0xff] }
 0x421   : > { %2421 = vrot.lane.b32.xlu0 %v2375_v34, %s3425_s10  ;;  %v1807_v62 = vmul.f32 %v5115_v24, %v4381_v23 }
 0x422   : > { %v4638_v56 = vadd.f32 %v1805_v48, %v1701_v8  ;;  %v1652_v3 = vpop.permute.xlu1 %1651  ;;  %v5116_v8 = vld [vmem:[#allocation57_spill] sm:$0xff] }
 0x423   : > { %v1662_v51 = vpop.permute.xlu0 %1661  ;;  %v1698_v26 = vadd.f32 %v1652_v3, %v4507_v60  ;;  %v2531_v48 = vmul.f32 %v5116_v8, %v4511_v37  ;;  %v1804_v3 = vmul.f32 %v5111_v55, %v4389_v53  ;;  %v1806_v55 = vmul.f32 %v5113_v47, %v4399_v54 }
 0x424   : > { %v1703_v39 = vadd.f32 %v1662_v51, %v4509_v49  ;;  %2415 = vrot.lane.b32.xlu1 %v2372_v0, %s3425_s10  ;;  %v2374_v49 = vmul.f32 %v5110_v59, %v4646_v15  ;;  %v5117_v51 = vld [vmem:[#allocation33_spill] sm:$0xff]  ;;  %v1808_v47 = vmul.f32 %v5115_v24, %v4409_v44 }
 0x425   : > { %2561 = vrot.lane.b32.xlu0 %v2529_v32, %s3426_s21  ;;  %v4654_v6 = vadd.f32 %v1802_v41, %v1698_v26  ;;  %v1809_v0 = vmul.f32 %v5117_v51, %v4391_v43  ;;  %v1810_v24 = vmul.f32 %v5117_v51, %v4419_v9 }
 0x426   : > { %v4656_v25 = vadd.f32 %v1807_v62, %v1703_v39  ;;  %v1656_v34 = vpop.permute.xlu1 %1655  ;;  %v5118_v39 = vld [vmem:[#allocation58_spill] sm:$0xff] }
 0x427   : > { %v1666_v60 = vpop.permute.xlu0 %1665  ;;  %v1700_v22 = vadd.f32 %v1656_v34, %v4523_v63  ;;  %v2533_v41 = vmul.f32 %v5118_v39, %v4527_v52  ;;  %v5119_v62 = vld [vmem:[#allocation34_spill] sm:$0xff] }
 0x428   : > { %v1705_v23 = vadd.f32 %v1666_v60, %v4525_v42  ;;  %2419 = vrot.lane.b32.xlu1 %v2374_v49, %s3425_s10  ;;  %v2376_v42 = vmul.f32 %v5112_v31, %v4664_v28  ;;  %v1811_v34 = vmul.f32 %v5119_v62, %v4401_v11 }
 0x429   : > { %2565 = vrot.lane.b32.xlu0 %v2531_v48, %s3426_s21  ;;  %v4672_v59 = vadd.f32 %v1804_v3, %v1700_v22 }
 0x42a   : > { %v4674_v32 = vadd.f32 %v1809_v0, %v1705_v23  ;;  %v1660_v26 = vpop.permute.xlu1 %1659  ;;  %v5121_v23 = vld [vmem:[#allocation35_spill] sm:$0xff] }
 0x42b   : > { %v1670_v63 = vpop.permute.xlu0 %1669  ;;  %v1702_v53 = vadd.f32 %v1660_v26, %v4539_v7  ;;  %v2530_v7 = vmul.f32 %v5114_v21, %v4543_v46  ;;  %v1813_v3 = vmul.f32 %v5121_v23, %v4411_v12 }
 0x42c   : > { %v1707_v43 = vadd.f32 %v1670_v63, %v4541_v35  ;;  %2423 = vrot.lane.b32.xlu1 %v2376_v42, %s3425_s10  ;;  %v5120_v35 = vld [vmem:[#allocation59_spill] sm:$0xff] }
 0x42d   : > { %2569 = vrot.lane.b32.xlu0 %v2533_v41, %s3426_s21  ;;  %v4688_v60 = vadd.f32 %v1806_v55, %v1702_v53  ;;  %v2535_v22 = vmul.f32 %v5120_v35, %v4545_v57  ;;  %v5123_v41 = vld [vmem:[#allocation36_spill] sm:$0xff] }
 0x42e   : > { %v4690_v31 = vadd.f32 %v1811_v34, %v1707_v43  ;;  %v1664_v49 = vpop.permute.xlu1 %1663  ;;  %v1815_v53 = vmul.f32 %v5123_v41, %v4421_v13  ;;  %v1812_v13 = vmul.f32 %v5119_v62, %v4429_v30  ;;  %v1814_v30 = vmul.f32 %v5121_v23, %v4437_v40 }
 0x42f   : > { %v1674_v48 = vpop.permute.xlu0 %1673  ;;  %v1704_v54 = vadd.f32 %v1664_v49, %v4557_v16  ;;  %v2532_v16 = vmul.f32 %v5116_v8, %v4561_v17  ;;  %v2534_v49 = vmul.f32 %v5118_v39, %v4579_v38  ;;  %v2536_v39 = vmul.f32 %v5120_v35, %v4594_v14 }
 0x430   : > { %v1709_v11 = vadd.f32 %v1674_v48, %v4559_v29  ;;  %2563 = vrot.lane.b32.xlu1 %v2530_v7, %s3426_s21  ;;  %v5122_v29 = vld [vmem:[#allocation60_spill] sm:$0xff]  ;;  %v1816_v40 = vmul.f32 %v5123_v41, %v4445_v50 }
 0x431   : > { %2573 = vrot.lane.b32.xlu0 %v2535_v22, %s3426_s21  ;;  %v4704_v0 = vadd.f32 %v1808_v47, %v1704_v54  ;;  %v2537_v42 = vmul.f32 %v5122_v29, %v4563_v61  ;;  %v5125_v54 = vld [vmem:[#allocation62_spill] sm:$0xff]  ;;  %v2538_v35 = vmul.f32 %v5122_v29, %v4613_v33 }
 0x432   : > { %v4706_v21 = vadd.f32 %v1813_v3, %v1709_v11  ;;  %v1668_v26 = vpop.permute.xlu1 %1667  ;;  %v2541_v11 = vmul.f32 %v5125_v54, %v4596_v58  ;;  %v2542_v50 = vmul.f32 %v5125_v54, %v4646_v15 }
 0x433   : > { %v1678_v63 = vpop.permute.xlu0 %1677  ;;  %v1706_v44 = vadd.f32 %v1668_v26, %v4575_v19  ;;  %v5124_v19 = vld [vmem:[#allocation61_spill] sm:$0xff]  ;;  %v5126_v26 = vld [vmem:[#allocation63_spill] sm:$0xff] }
 0x434   : > { %v1711_v12 = vadd.f32 %v1678_v63, %v4577_v1  ;;  %2567 = vrot.lane.b32.xlu1 %v2532_v16, %s3426_s21  ;;  %v2539_v1 = vmul.f32 %v5124_v19, %v4581_v10  ;;  %v2543_v63 = vmul.f32 %v5126_v26, %v4615_v5  ;;  %v2540_v29 = vmul.f32 %v5124_v19, %v4632_v27 }
 0x435   : > { %2577 = vrot.lane.b32.xlu0 %v2537_v42, %s3426_s21  ;;  %v1826_v43 = vadd.f32 %v1810_v24, %v1706_v44 }
 0x436   : > { %v1831_v55 = vadd.f32 %v1815_v53, %v1711_v12  ;;  %v1672_v8 = vpop.permute.xlu1 %1671 }
 0x437   : > { %v1938_v34 = vpop.permute.xlu0 %1937  ;;  %v1708_v48 = vadd.f32 %v1672_v8, %v4591_v36 }
 0x438   : > { %v1985_v9 = vadd.f32 %v1938_v34, %v4604_v45  ;;  %2571 = vrot.lane.b32.xlu1 %v2534_v49, %s3426_s21 }
 0x439   : > { %2581 = vrot.lane.b32.xlu0 %v2539_v1, %s3426_s21  ;;  %v1828_v51 = vadd.f32 %v1812_v13, %v1708_v48 }
 0x43a   : > { %v1676_v7 = vpop.permute.xlu1 %1675 }
 0x43b   : > { %v1942_v22 = vpop.permute.xlu0 %1941  ;;  %v1710_v36 = vadd.f32 %v1676_v7, %v4610_v18 }
 0x43c   : > { %v1987_v45 = vadd.f32 %v1942_v22, %v4623_v4  ;;  %2575 = vrot.lane.b32.xlu1 %v2536_v39, %s3426_s21 }
 0x43d   : > { %2585 = vrot.lane.b32.xlu0 %v2541_v11, %s3426_s21  ;;  %v1830_v62 = vadd.f32 %v1814_v30, %v1710_v36 }
 0x43e   : > { %v1680_v47 = vpop.permute.xlu1 %1679 }
 0x43f   : > { %v1946_v3 = vpop.permute.xlu0 %1945  ;;  %v1712_v18 = vadd.f32 %v1680_v47, %v4629_v2 }
 0x440   : > { %v1989_v4 = vadd.f32 %v1946_v3, %v4638_v56  ;;  %2579 = vrot.lane.b32.xlu1 %v2538_v35, %s3426_s21 }
 0x441   : > { %2589 = vrot.lane.b32.xlu0 %v2543_v63, %s3426_s21  ;;  %v1832_v23 = vadd.f32 %v1816_v40, %v1712_v18 }
 0x442   : > { %v1940_v16 = vpop.permute.xlu1 %1939 }
 0x443   : > { %v1950_v42 = vpop.permute.xlu0 %1949  ;;  %v1986_v44 = vadd.f32 %v1940_v16, %v4654_v6  ;;  %v2544_v6 = vmul.f32 %v5126_v26, %v4664_v28 }
 0x444   : > { %v1991_v12 = vadd.f32 %v1950_v42, %v4656_v25  ;;  %2583 = vrot.lane.b32.xlu1 %v2540_v29, %s3426_s21 }
 0x446   : > { %v1944_v2 = vpop.permute.xlu1 %1943 }
 0x447   : > { %v1954_v56 = vpop.permute.xlu0 %1953  ;;  %v1988_v24 = vadd.f32 %v1944_v2, %v4672_v59 }
 0x448   : > { %v1993_v41 = vadd.f32 %v1954_v56, %v4674_v32  ;;  %2587 = vrot.lane.b32.xlu1 %v2542_v50, %s3426_s21 }
 0x44a   : > { %v1948_v53 = vpop.permute.xlu1 %1947 }
 0x44b   : > { %v1958_v8 = vpop.permute.xlu0 %1957  ;;  %v1990_v25 = vadd.f32 %v1948_v53, %v4688_v60  ;;  %v5127_v60 = vld [vmem:[#allocation40_spill] sm:$0xff] }
 0x44c   : > { %v1995_v34 = vadd.f32 %v1958_v8, %v4690_v31  ;;  %2591 = vrot.lane.b32.xlu1 %v2544_v6, %s3426_s21  ;;  %v2257_v36 = vmul.f32 %v5127_v60, %v4495_v20 }
 0x44e   : > { %v1952_v49 = vpop.permute.xlu1 %1951 }
 0x44f   : > { %v1962_v19 = vpop.permute.xlu0 %1961  ;;  %v1992_v1 = vadd.f32 %v1952_v49, %v4704_v0  ;;  %v5128_v0 = vld [vmem:[#allocation41_spill] sm:$0xff] }
 0x450   : > { %v1997_v59 = vadd.f32 %v1962_v19, %v4706_v21  ;;  %v2259_v21 = vmul.f32 %v5128_v0, %v4511_v37  ;;  %v5130_v37 = vld [vmem:[#allocation43_spill] sm:$0xff]  ;;  %v2260_v53 = vmul.f32 %v5128_v0, %v4561_v17 }
 0x452   : > { %v1956_v32 = vpop.permute.xlu1 %1955 }
 0x453   : > { %v1966_v48 = vpop.permute.xlu0 %1965  ;;  %v1994_v13 = vadd.f32 %v1956_v32, %v1826_v43 }
 0x454   : > { %v1999_v7 = vadd.f32 %v1966_v48, %v1831_v55 }
 0x456   : > { %v1960_v22 = vpop.permute.xlu1 %1959 }
 0x457   : > { %v2106_v39 = vpop.permute.xlu0 %2105  ;;  %v1996_v54 = vadd.f32 %v1960_v22, %v1828_v51 }
 0x458   : > { %v2153_v11 = vadd.f32 %v2106_v39, %v1985_v9  ;;  %v5129_v9 = vld [vmem:[#allocation42_spill] sm:$0xff] }
 0x459   : > { %v2261_v51 = vmul.f32 %v5129_v9, %v4527_v52  ;;  %v2262_v32 = vmul.f32 %v5129_v9, %v4579_v38 }
 0x45a   : > { %v4769_v31 = vadd.f32 %v2257_v36, %v2153_v11  ;;  %v1964_v30 = vpop.permute.xlu1 %1963 }
 0x45b   : > { %v2110_v47 = vpop.permute.xlu0 %2109  ;;  %v1998_v3 = vadd.f32 %v1964_v30, %v1830_v62  ;;  %v2263_v62 = vmul.f32 %v5130_v37, %v4545_v57 }
 0x45c   : > { %v2155_v35 = vadd.f32 %v2110_v47, %v1987_v45  ;;  %v2258_v45 = vmul.f32 %v5127_v60, %v4543_v46  ;;  %v2264_v60 = vmul.f32 %v5130_v37, %v4594_v14 }
 0x45e   : > { %v4773_v26 = vadd.f32 %v2259_v21, %v2155_v35  ;;  %v1968_v43 = vpop.permute.xlu1 %1967 }
 0x45f   : > { %v2114_v55 = vpop.permute.xlu0 %2113  ;;  %v2000_v63 = vadd.f32 %v1968_v43, %v1832_v23 }
 0x460   : > { %v2157_v18 = vadd.f32 %v2114_v55, %v1989_v4 }
 0x462   : > { %v4777_v40 = vadd.f32 %v2261_v51, %v2157_v18  ;;  %v2108_v20 = vpop.permute.xlu1 %2107 }
 0x463   : > { %v2118_v16 = vpop.permute.xlu0 %2117  ;;  %v2154_v42 = vadd.f32 %v2108_v20, %v1986_v44  ;;  %v5131_v44 = vld [vmem:[#allocation44_spill] sm:$0xff] }
 0x464   : > { %v2159_v29 = vadd.f32 %v2118_v16, %v1991_v12  ;;  %v2265_v12 = vmul.f32 %v5131_v44, %v4563_v61  ;;  %v2266_v0 = vmul.f32 %v5131_v44, %v4613_v33 }
 0x465   : > { %v4783_v2 = vadd.f32 %v2258_v45, %v2154_v42 }
 0x466   : > { %v4785_v56 = vadd.f32 %v2263_v62, %v2159_v29  ;;  %v2112_v4 = vpop.permute.xlu1 %2111 }
 0x467   : > { %v2122_v23 = vpop.permute.xlu0 %2121  ;;  %v2156_v50 = vadd.f32 %v2112_v4, %v1988_v24  ;;  %v5132_v24 = vld [vmem:[#allocation45_spill] sm:$0xff] }
 0x468   : > { %v2161_v52 = vadd.f32 %v2122_v23, %v1993_v41  ;;  %v2267_v41 = vmul.f32 %v5132_v24, %v4581_v10  ;;  %v2268_v18 = vmul.f32 %v5132_v24, %v4632_v27  ;;  %v5136_v24 = vld [vmem:[#allocation65_spill] sm:$0xff] }
 0x469   : > { %v4791_v8 = vadd.f32 %v2260_v53, %v2156_v50 }
 0x46a   : > { %v4793_v46 = vadd.f32 %v2265_v12, %v2161_v52  ;;  %v2116_v6 = vpop.permute.xlu1 %2115 }
 0x46b   : > { %v2126_v57 = vpop.permute.xlu0 %2125  ;;  %v2158_v49 = vadd.f32 %v2116_v6, %v1990_v25  ;;  %v5133_v25 = vld [vmem:[#allocation46_spill] sm:$0xff]  ;;  %v5135_v6 = vld [vmem:[#allocation64_spill] sm:$0xff] }
 0x46c   : > { %v2163_v19 = vadd.f32 %v2126_v57, %v1995_v34  ;;  %v2269_v34 = vmul.f32 %v5133_v25, %v4596_v58  ;;  %v2270_v33 = vmul.f32 %v5133_v25, %v4646_v15 }
 0x46d   : > { %v4799_v48 = vadd.f32 %v2262_v32, %v2158_v49 }
 0x46e   : > { %v4801_v17 = vadd.f32 %v2267_v41, %v2163_v19  ;;  %v2120_v22 = vpop.permute.xlu1 %2119 }
 0x46f   : > { %v2130_v61 = vpop.permute.xlu0 %2129  ;;  %v2160_v39 = vadd.f32 %v2120_v22, %v1992_v1  ;;  %v5134_v1 = vld [vmem:[#allocation47_spill] sm:$0xff] }
 0x470   : > { %v2165_v11 = vadd.f32 %v2130_v61, %v1997_v59  ;;  %v2271_v59 = vmul.f32 %v5134_v1, %v4615_v5 }
 0x471   : > { %v4807_v36 = vadd.f32 %v2264_v60, %v2160_v39  ;;  %v5137_v60 = vld [vmem:[#allocation66_spill] sm:$0xff] }
 0x472   : > { %v4809_v38 = vadd.f32 %v2269_v34, %v2165_v11  ;;  %v2124_v30 = vpop.permute.xlu1 %2123 }
 0x473   : > { %v2134_v10 = vpop.permute.xlu0 %2133  ;;  %v2162_v47 = vadd.f32 %v2124_v30, %v1994_v13 }
 0x474   : > { %v2167_v35 = vadd.f32 %v2134_v10, %v1999_v7 }
 0x475   : > { %v4815_v21 = vadd.f32 %v2266_v0, %v2162_v47 }
 0x476   : > { %v4817_v14 = vadd.f32 %v2271_v59, %v2167_v35  ;;  %v2128_v43 = vpop.permute.xlu1 %2127 }
 0x477   : > { %v2394_v58 = vpop.permute.xlu0 %2393  ;;  %v2164_v55 = vadd.f32 %v2128_v43, %v1996_v54  ;;  %v2272_v54 = vmul.f32 %v5134_v1, %v4664_v28  ;;  %v5138_v1 = vld [vmem:[#allocation67_spill] sm:$0xff] }
 0x478   : > { %v2441_v53 = vadd.f32 %v2394_v58, %v4769_v31 }
 0x479   : > { %v4821_v9 = vadd.f32 %v2268_v18, %v2164_v55  ;;  %v5139_v18 = vld [vmem:[#allocation68_spill] sm:$0xff] }
 0x47a   : > { %v2132_v13 = vpop.permute.xlu1 %2131 }
 0x47b   : > { %v2398_v7 = vpop.permute.xlu0 %2397  ;;  %v2166_v51 = vadd.f32 %v2132_v13, %v1998_v3 }
 0x47c   : > { %v2443_v28 = vadd.f32 %v2398_v7, %v4773_v26 }
 0x47d   : > { %v4825_v20 = vadd.f32 %v2270_v33, %v2166_v51 }
 0x47e   : > { %v2136_v5 = vpop.permute.xlu1 %2135 }
 0x47f   : > { %v2402_v16 = vpop.permute.xlu0 %2401  ;;  %v2168_v42 = vadd.f32 %v2136_v5, %v2000_v63 }
 0x480   : > { %v2445_v32 = vadd.f32 %v2402_v16, %v4777_v40 }
 0x481   : > { %v4829_v29 = vadd.f32 %v2272_v54, %v2168_v42  ;;  %v5140_v42 = vld [vmem:[#allocation69_spill] sm:$0xff] }
 0x482   : > { %v2396_v27 = vpop.permute.xlu1 %2395 }
 0x483   : > { %v2406_v45 = vpop.permute.xlu0 %2405  ;;  %v2442_v39 = vadd.f32 %v2396_v27, %v4783_v2 }
 0x484   : > { %v2447_v11 = vadd.f32 %v2406_v45, %v4785_v56 }
 0x486   : > { %v2400_v37 = vpop.permute.xlu1 %2399 }
 0x487   : > { %v2410_v62 = vpop.permute.xlu0 %2409  ;;  %v2444_v47 = vadd.f32 %v2400_v37, %v4791_v8 }
 0x488   : > { %v2449_v35 = vadd.f32 %v2410_v62, %v4793_v46 }
 0x48a   : > { %v2404_v4 = vpop.permute.xlu1 %2403 }
 0x48b   : > { %v2414_v3 = vpop.permute.xlu0 %2413  ;;  %v2446_v55 = vadd.f32 %v2404_v4, %v4799_v48 }
 0x48c   : > { %v2451_v8 = vadd.f32 %v2414_v3, %v4801_v17  ;;  %v5141_v3 = vld [vmem:[#allocation70_spill] sm:$0xff] }
 0x48e   : > { %v2408_v23 = vpop.permute.xlu1 %2407 }
 0x48f   : > { %v2418_v50 = vpop.permute.xlu0 %2417  ;;  %v2448_v16 = vadd.f32 %v2408_v23, %v4807_v36 }
 0x490   : > { %v2453_v48 = vadd.f32 %v2418_v50, %v4809_v38 }
 0x492   : > { %v2412_v15 = vpop.permute.xlu1 %2411 }
 0x493   : > { %v2422_v52 = vpop.permute.xlu0 %2421  ;;  %v2450_v36 = vadd.f32 %v2412_v15, %v4815_v21  ;;  %v5142_v15 = vld [vmem:[#allocation71_spill] sm:$0xff] }
 0x494   : > { %v2455_v4 = vadd.f32 %v2422_v52, %v4817_v14 }
 0x496   : > { %v4833_v44 = vpop.permute.xlu1 %2415 }
 0x497   : > { %v2562_v63 = vpop.permute.xlu0 %2561  ;;  %v2452_v21 = vadd.f32 %v4833_v44, %v4821_v9 }
 0x498   : > { %v2609_v12 = vadd.f32 %v2562_v63, %v2441_v53 }
 0x49a   : > { %v2705_v57 = vadd.f32 %v5135_v6, %v2609_v12  ;;  %v4837_v49 = vpop.permute.xlu1 %2419 }
 0x49b   : > { %v2566_v19 = vpop.permute.xlu0 %2565 }
 0x49c   : > { %2721 = vst.msk [vmem:[%s4839_s22] sm:$0xff] %vm577_vm0, %v2705_v57  ;;  %v2611_v31 = vadd.f32 %v2566_v19, %v2443_v28  ;;  %v2454_v57 = vadd.f32 %v4837_v49, %v4825_v20 }
 0x49e   : > { %v2707_v41 = vadd.f32 %v5136_v24, %v2611_v31  ;;  %v4845_v22 = vpop.permute.xlu1 %2423 }
 0x49f   : > { %v2570_v26 = vpop.permute.xlu0 %2569  ;;  %v2456_v44 = vadd.f32 %v4845_v22, %v4829_v29 }
 0x4a0   : > { %2723 = vst.msk [vmem:[%s4839_s22 + $0x10] sm:$0xff] %vm577_vm0, %v2707_v41  ;;  %v2613_v61 = vadd.f32 %v2570_v26, %v2445_v32 }
 0x4a2   : > { %v2709_v25 = vadd.f32 %v5137_v60, %v2613_v61  ;;  %v2564_v34 = vpop.permute.xlu1 %2563 }
 0x4a3   : > { %v2574_v30 = vpop.permute.xlu0 %2573  ;;  %v2610_v40 = vadd.f32 %v2564_v34, %v2442_v39 }
 0x4a4   : > { %2725 = vst.msk [vmem:[%s4839_s22 + $0x20] sm:$0xff] %vm577_vm0, %v2709_v25  ;;  %v2615_v10 = vadd.f32 %v2574_v30, %v2447_v11 }
 0x4a5   : > { %v2706_v0 = vadd.f32 %v5135_v6, %v2610_v40 }
 0x4a6   : > { %v2711_v2 = vadd.f32 %v5138_v1, %v2615_v10  ;;  %v2568_v59 = vpop.permute.xlu1 %2567 }
 0x4a7   : > { %v2578_v56 = vpop.permute.xlu0 %2577  ;;  %2722 = vst.msk [vmem:[%s4839_s22 + $0x8] sm:$0xff] %vm577_vm0, %v2706_v0  ;;  %v2612_v43 = vadd.f32 %v2568_v59, %v2444_v47 }
 0x4a8   : > { %2727 = vst.msk [vmem:[%s4839_s22 + $0x30] sm:$0xff] %vm577_vm0, %v2711_v2  ;;  %v2617_v58 = vadd.f32 %v2578_v56, %v2449_v35 }
 0x4a9   : > { %v2708_v46 = vadd.f32 %v5136_v24, %v2612_v43 }
 0x4aa   : > { %v2713_v13 = vadd.f32 %v5139_v18, %v2617_v58  ;;  %v2572_v7 = vpop.permute.xlu1 %2571 }
 0x4ab   : > { %v2582_v51 = vpop.permute.xlu0 %2581  ;;  %2724 = vst.msk [vmem:[%s4839_s22 + $0x18] sm:$0xff] %vm577_vm0, %v2708_v46  ;;  %v2614_v33 = vadd.f32 %v2572_v7, %v2446_v55 }
 0x4ac   : > { %2729 = vst.msk [vmem:[%s4839_s22 + $0x40] sm:$0xff] %vm577_vm0, %v2713_v13  ;;  %v2619_v5 = vadd.f32 %v2582_v51, %v2451_v8 }
 0x4ad   : > { %v2710_v17 = vadd.f32 %v5137_v60, %v2614_v33 }
 0x4ae   : > { %v2715_v54 = vadd.f32 %v5140_v42, %v2619_v5  ;;  %v2576_v27 = vpop.permute.xlu1 %2575 }
 0x4af   : > { %v2586_v45 = vpop.permute.xlu0 %2585  ;;  %2726 = vst.msk [vmem:[%s4839_s22 + $0x28] sm:$0xff] %vm577_vm0, %v2710_v17  ;;  %v2616_v37 = vadd.f32 %v2576_v27, %v2448_v16 }
 0x4b0   : > { %2731 = vst.msk [vmem:[%s4839_s22 + $0x50] sm:$0xff] %vm577_vm0, %v2715_v54  ;;  %v2621_v62 = vadd.f32 %v2586_v45, %v2453_v48 }
 0x4b1   : > { %v2712_v38 = vadd.f32 %v5138_v1, %v2616_v37 }
 0x4b2   : > { %v2717_v23 = vadd.f32 %v5141_v3, %v2621_v62  ;;  %v2580_v50 = vpop.permute.xlu1 %2579 }
 0x4b3   : > { %v2590_v53 = vpop.permute.xlu0 %2589  ;;  %2728 = vst.msk [vmem:[%s4839_s22 + $0x38] sm:$0xff] %vm577_vm0, %v2712_v38  ;;  %v2618_v63 = vadd.f32 %v2580_v50, %v2450_v36 }
 0x4b4   : > { %2733 = vst.msk [vmem:[%s4839_s22 + $0x60] sm:$0xff] %vm577_vm0, %v2717_v23  ;;  %v2623_v12 = vadd.f32 %v2590_v53, %v2455_v4 }
 0x4b5   : > { %v2714_v14 = vadd.f32 %v5139_v18, %v2618_v63 }
 0x4b6   : > { %v2719_v52 = vadd.f32 %v5142_v15, %v2623_v12  ;;  %v2584_v28 = vpop.permute.xlu1 %2583 }
 0x4b7   : > { %2730 = vst.msk [vmem:[%s4839_s22 + $0x48] sm:$0xff] %vm577_vm0, %v2714_v14  ;;  %v2620_v6 = vadd.f32 %v2584_v28, %v2452_v21 }
 0x4b8   : > { %2735 = vst.msk [vmem:[%s4839_s22 + $0x70] sm:$0xff] %vm577_vm0, %v2719_v52 }
 0x4b9   : > { %v2716_v19 = vadd.f32 %v5140_v42, %v2620_v6 }
 0x4ba   : > { %v2588_v31 = vpop.permute.xlu1 %2587 }
 0x4bb   : > { %2732 = vst.msk [vmem:[%s4839_s22 + $0x58] sm:$0xff] %vm577_vm0, %v2716_v19  ;;  %v2622_v9 = vadd.f32 %v2588_v31, %v2454_v57 }
 0x4bd   : > { %v2718_v32 = vadd.f32 %v5141_v3, %v2622_v9 }
 0x4be   : > { %v2592_v24 = vpop.permute.xlu1 %2591 }
 0x4bf   : > { %2734 = vst.msk [vmem:[%s4839_s22 + $0x68] sm:$0xff] %vm577_vm0, %v2718_v32  ;;  %v2624_v41 = vadd.f32 %v2592_v24, %v2456_v44 }
 0x4c1   : > { %v2720_v20 = vadd.f32 %v5142_v15, %v2624_v41 }
 0x4c3   : > { %2736 = vst.msk [vmem:[%s4839_s22 + $0x78] sm:$0xff] %vm577_vm0, %v2720_v20 }
 0x4c4   : > { %3335 = shalt.err (!%p3332_p8)
}
 0x4c5   : > { %s3336_s23 = scalar_lea.hbm %s4909_s11, 2048  ;;  %s3340_s20 = scalar_lea.hbm %s4965_s7, 4096 }
 0x4c6   : > { %p3337_p13 = scmp.ne.s32.totalorder %s4909_s11, %s3336_s23  ;;  %p3341_p9 = scmp.lt.u32.totalorder %s4909_s11, %s4965_s7 }
 0x4c7   : > { %p3342_p10 = scmp.lt.u32.totalorder %s3340_s20, %s3336_s23  ;;  %p3344_p6 = scmp.lt.u32.totalorder %s3336_s23, %s4909_s11 }
 0x4c8   : > { %p3338_p0 = pnand %p3337_p13, %p5143_p12 }
 0x4c9   : > { %p3343_p11 = por %p3342_p10, %p3341_p9 }
 0x4ca   : > { %p3339_p2 = pneg %p3338_p0 }
 0x4cb   : > { %p3345_p5 = por %p3344_p6, %p3343_p11 }
 0x4cd   : > { %p3346_p7 = pnand %p3345_p5, %p3339_p2 }
 0x4cf   : > { %3349 = shalt.err (!%p3346_p7)
}
 0x4d0   : > { %s3428_s8 = smov 128   ;;  %s3429_s16 = smov 8  }
 0x4d1   : > { %3017 = dma.vmem_to_hbm [thread:$0]  (%p5143_p12), %s4911_s17, 2048, %s4909_s11, %s2738_s30, %s3428_s8, %s3428_s8, %s3429_s16  }
 0x4d2 PF: > { %s2766_s14 = sand.u32 1, %s3388_s24   ;;  %p5144_p4 = scmp.ne.s32.totalorder %s5031_s1, 0 }
 0x4d3   : > { %p5145_p1 = scmp.ge.s32.totalorder %s3400_s27, 2  ;;  %s2767_s15 = scalar_lea.sflag [#allocation5], %s2766_s14 }
 0x4d5   : > { %p3043_p3 = pnand %p5145_p1, %p5144_p4 }
 0x4d7   : > { %3383 = dma.done.wait (!%p3043_p3), %s2767_s15, 2048  }
 0x4d8   : > { %3385 = vsyncadd (!%p3043_p3), %s2767_s15, 4294965248  ;;  %p23_p8 = scmp.ge.s32.totalorder %s3645_s19, 4   ;;  %s5146_s24 = smov %s3392_s25 }
 0x4d9   : > { %s5147_s25 = smov %s3396_s26  ;;  %s5148_s26 = smov %s3656_s12 }
 0x4da   : > { %s5149_s27 = smov %s3645_s19  ;;  %25 = sbr.rel (!%p23_p8) target bundleno = 10 (0xa), region = 117 }
 0x4e1   :  { %2772 = vsyncpa [#allocation4], 1 }
 0x4e2   :  { %2774 = vsyncpa [#allocation4 + $0x1], 1 }
 0x4e3   :  { %2775 = vsyncpa [#allocation7], 1 }
 0x4e4   :  { %2776 = vsyncpa [#allocation10], 1 }
 0x4e5   :  { %2777 = vsyncpa [#allocation13], 1 }
 0x4e6   :  { %2778 = vsyncpa [#allocation5], 1 }
 0x4e7   :  { %2780 = vsyncpa [#allocation5 + $0x1], 1 }

</bundles_post_ra>
